<compile_context>
chip_gen: v6e
topology: v6e:2x2x1
jax: 0.10.0
libtpu: 0.0.40
codegen_flags: <defaults>
</compile_context>

<pallas_src>
import jax
import jax.numpy as jnp
from jax.experimental import pallas as pl
from jax.experimental.pallas import tpu as pltpu

# ----------------------------------------------------------------------------
# Small, self-consistent dims (scaled-down analog of
# init_dict = {'datadim': 4*160*144, 'interdim1': 2500, 'interdim2': 150, 'outdim': 7}).
# ----------------------------------------------------------------------------
BATCH = 2
CHANNELS = 4
SPATIAL = 16                              # 16 x 16 image
DATADIM = CHANNELS * SPATIAL * SPATIAL    # 1024  (analog of 92160)
INTERDIM1 = 256                           # analog of 2500 (-> pad 2560 at real dims)
INTERDIM2 = 128                           # analog of 150  (-> pad 256 at real dims)
OUTDIM = 7                                # same as the module
OUT_PAD = 128                             # lane-dense padded fc3 width

K_TILE = 512        # toy DATADIM=1024 -> 2 K-steps to exercise the pipeline
M_SUBLANE = 16      # bf16 sublane pack; batch rows are padded only up to this
M_TILE_MAX = 128    # cap on the batch tile for large batches


def _round_up(x, m):
    return (x + m - 1) // m * m


def mlp_kernel(x_ref, w1_ref, b1_ref, w2_ref, b2_ref, w3_ref, b3_ref,
               o_ref, acc_ref):
    """K-tiled fc1 accumulation; fused bias+tanh -> fc2 -> tanh -> fc3 on the
    last reduction step. bf16 x bf16 matmuls with f32 accumulation."""
    k = pl.program_id(1)

    @pl.when(k == 0)
    def _():
        acc_ref[...] = jnp.zeros_like(acc_ref)

    # Layer-1 partial product for this K slice (W1 streaming = HBM roofline).
    acc_ref[...] += jnp.dot(x_ref[...], w1_ref[...],
                            preferred_element_type=jnp.float32)

    @pl.when(k == pl.num_programs(1) - 1)
    def _():
        h1 = jnp.tanh(acc_ref[...] + b1_ref[...])                       # (M, H1) f32
        h2 = jnp.tanh(
            jnp.dot(h1.astype(w2_ref.dtype), w2_ref[...],
                    preferred_element_type=jnp.float32) + b2_ref[...])   # (M, H2) f32
        out = (jnp.dot(h2.astype(w3_ref.dtype), w3_ref[...],
                       preferred_element_type=jnp.float32)
               + b3_ref[...])                                            # (M, OUT_PAD)
        o_ref[...] = out.astype(o_ref.dtype)


def _run_pallas(x_pad, w1, b1, w2, b2, w3, b3, *, m_tile, k_tile,
                single_buffer_residents):
    """Build + invoke the pallas_call for padded inputs."""
    mp, dp = x_pad.shape
    h1 = w1.shape[1]
    h2 = w2.shape[1]
    n_out = w3.shape[1]                         # OUT_PAD
    grid = (mp // m_tile, dp // k_tile)

    # Grid-invariant operands: constant index_map (never re-DMA'd) and, when
    # supported, a single VMEM buffer instead of the default double buffer.
    resident_kwargs = (
        dict(pipeline_mode=pl.Buffered(1)) if single_buffer_residents else {})

    def resident(shape):
        return pl.BlockSpec(shape, lambda i, k: (0, 0), **resident_kwargs)

    # VMEM working set; only raise the scoped limit when actually needed
    # (matters at real dims on v5e's 16 MiB / v6e's 32 MiB default).
    res_bufs = 1 if single_buffer_residents else 2
    vmem_bytes = (
        2 * m_tile * k_tile * 2                       # x tile (double-buffered)
        + 2 * k_tile * h1 * 2                         # W1 K-slice (double-buffered)
        + res_bufs * ((h1 * h2 + h2 * n_out) * 2      # resident W2 / W3
                      + (h1 + h2 + n_out) * 4)        # resident biases
        + m_tile * h1 * 4                             # fc1 accumulator scratch
        + 2 * m_tile * n_out * 4)                     # output block
    vmem_limit = None
    if vmem_bytes > 12 * (1 << 20):
        vmem_limit = min(int(vmem_bytes * 1.5) + (4 << 20), 96 << 20)

    # Traffic actually streamed (W1 is re-read once per batch tile).
    flops = 2 * mp * (dp * h1 + h1 * h2 + h2 * n_out)
    bytes_accessed = (x_pad.size * 2
                      + grid[0] * w1.size * 2
                      + (w2.size + w3.size) * 2
                      + (b1.size + b2.size + b3.size) * 4
                      + mp * n_out * 4)

    return pl.pallas_call(
        mlp_kernel,
        out_shape=jax.ShapeDtypeStruct((mp, n_out), jnp.float32),
        grid_spec=pltpu.PrefetchScalarGridSpec(
            num_scalar_prefetch=0,
            grid=grid,
            in_specs=[
                pl.BlockSpec((m_tile, k_tile), lambda i, k: (i, k)),   # x tile
                pl.BlockSpec((k_tile, h1), lambda i, k: (k, 0)),       # W1 K-slice (streamed)
                resident((1, h1)),                                     # b1
                resident((h1, h2)),                                    # W2
                resident((1, h2)),                                     # b2
                resident((h2, n_out)),                                 # W3
                resident((1, n_out)),                                  # b3
            ],
            out_specs=pl.BlockSpec((m_tile, n_out), lambda i, k: (i, 0)),
            scratch_shapes=[pltpu.VMEM((m_tile, h1), jnp.float32)],    # fc1 accumulator
        ),
        compiler_params=pltpu.CompilerParams(
            dimension_semantics=("parallel", "arbitrary"),
            vmem_limit_bytes=vmem_limit),
        cost_estimate=pl.CostEstimate(
            flops=flops,
            transcendentals=mp * (h1 + h2),
            bytes_accessed=bytes_accessed),
    )(x_pad, w1, b1, w2, b2, w3, b3)


def neural_network_forward(x, params):
    """JAX wrapper mirroring NeuralNetwork.forward. x: (B, C, H, W) float32."""
    w1, b1, w2, b2, w3, b3 = params          # bf16 weights, f32 biases (w3/b3 lane-padded)
    b = x.shape[0]
    x_flat = x.reshape(b, -1).astype(jnp.bfloat16)   # torch: x.view(x.size(0), -1)
    d = x_flat.shape[1]

    # M: pad only to the bf16 sublane pack (16) for small batches, never to 128.
    if b <= M_TILE_MAX:
        m_tile = _round_up(b, M_SUBLANE)
        mp = m_tile
    else:
        m_tile = M_TILE_MAX
        mp = _round_up(b, m_tile)
    # K: pad the flattened feature dim to the K-tile grid.
    k_tile = min(K_TILE, _round_up(d, M_SUBLANE * 8))
    dp = _round_up(d, k_tile)

    x_pad = x_flat
    if mp != b or dp != d:
        x_pad = jnp.pad(x_flat, ((0, mp - b), (0, dp - d)))
    w1_pad = w1
    if dp != d:
        # At real dims, do this once at parameter-load time, not per call.
        w1_pad = jnp.pad(w1, ((0, dp - d), (0, 0)))

    try:
        out_pad = _run_pallas(x_pad, w1_pad, b1, w2, b2, w3, b3,
                              m_tile=m_tile, k_tile=k_tile,
                              single_buffer_residents=True)
    except Exception:
        # pipeline_mode=pl.Buffered(1) unsupported in this jax version: fall back
        # to default double-buffered residents (same math, slightly more VMEM).
        out_pad = _run_pallas(x_pad, w1_pad, b1, w2, b2, w3, b3,
                              m_tile=m_tile, k_tile=k_tile,
                              single_buffer_residents=False)

    # Slice away batch padding and the fc3 lane padding (7 real outputs).
    return out_pad[:b, :OUTDIM]


def init_params(key):
    """Deterministic init. Weights stored as (in_features, out_features),
    cast to bf16; biases kept f32. fc3 is lane-padded OUTDIM -> OUT_PAD."""
    def linear(key, fan_in, fan_out):
        kw, kb = jax.random.split(key)
        bound = float(fan_in) ** -0.5   # nn.Linear default U(-1/sqrt(fan_in), +)
        w = jax.random.uniform(kw, (fan_in, fan_out), jnp.float32, -bound, bound)
        b = jax.random.uniform(kb, (1, fan_out), jnp.float32, -bound, bound)
        return w, b

    k1, k2, k3 = jax.random.split(key, 3)
    w1, b1 = linear(k1, DATADIM, INTERDIM1)
    w2, b2 = linear(k2, INTERDIM1, INTERDIM2)
    w3, b3 = linear(k3, INTERDIM2, OUTDIM)

    w1 = w1.astype(jnp.bfloat16)
    w2 = w2.astype(jnp.bfloat16)
    w3_pad = (jnp.zeros((INTERDIM2, OUT_PAD), jnp.bfloat16)
              .at[:, :OUTDIM].set(w3.astype(jnp.bfloat16)))
    b3_pad = jnp.zeros((1, OUT_PAD), jnp.float32).at[:, :OUTDIM].set(b3)
    return w1, b1, w2, b2, w3_pad, b3_pad


def reference_forward(x, params):
    """Pure-JAX reference using the same bf16 weights / bf16 activations."""
    w1, b1, w2, b2, w3, b3 = params
    h = x.reshape(x.shape[0], -1).astype(jnp.bfloat16)
    h = jnp.tanh(jnp.dot(h, w1, preferred_element_type=jnp.float32) + b1)
    h = jnp.tanh(jnp.dot(h.astype(jnp.bfloat16), w2,
                         preferred_element_type=jnp.float32) + b2)
    out = jnp.dot(h.astype(jnp.bfloat16), w3,
                  preferred_element_type=jnp.float32) + b3
    return out[:, :OUTDIM]


if __name__ == "__main__":
    key = jax.random.PRNGKey(0)
    kx, kp = jax.random.split(key)

    x = jax.random.normal(kx, (BATCH, CHANNELS, SPATIAL, SPATIAL), jnp.float32)
    params = init_params(kp)

    out = neural_network_forward(x, params)
    out = jax.block_until_ready(out)

    ref = reference_forward(x, params)
    assert out.shape == (BATCH, OUTDIM), out.shape
    # bf16 weights/activations with f32 accumulation -> relax tolerance vs f32.
    assert jnp.allclose(out, ref, atol=1e-2, rtol=1e-2), "mismatch vs reference"

    print("KERNEL_OK")
</pallas_src>

<mosaic_0001>
module attributes {stable_mosaic.version = 11 : i64} {
  func.func @mlp_kernel(%arg0: i32, %arg1: i32, %arg2: memref<16x512xbf16, #tpu.memory_space<vmem>>, %arg3: memref<512x256xbf16, #tpu.memory_space<vmem>>, %arg4: memref<1x256xf32, #tpu.memory_space<vmem>>, %arg5: memref<256x128xbf16, #tpu.memory_space<vmem>>, %arg6: memref<1x128xf32, #tpu.memory_space<vmem>>, %arg7: memref<128x128xbf16, #tpu.memory_space<vmem>>, %arg8: memref<1x128xf32, #tpu.memory_space<vmem>>, %arg9: memref<16x128xf32, #tpu.memory_space<vmem>>, %arg10: memref<16x256xf32, #tpu.memory_space<vmem>>) attributes {dimension_semantics = [#tpu.dimension_semantics<parallel>, #tpu.dimension_semantics<arbitrary>], iteration_bounds = array<i64: 1, 2>, scalar_prefetch = 0 : i64, scratch_operands = 1 : i64, tpu.core_type = #tpu.core_type<tc>, window_params = [{transform_indices = @transform_0, window_bounds = array<i64: 16, 512>}, {transform_indices = @transform_1, window_bounds = array<i64: 512, 256>}, {pipeline_mode = #tpu.pipeline_mode<synchronous>, transform_indices = @transform_2, window_bounds = array<i64: 1, 256>}, {pipeline_mode = #tpu.pipeline_mode<synchronous>, transform_indices = @transform_3, window_bounds = array<i64: 256, 128>}, {pipeline_mode = #tpu.pipeline_mode<synchronous>, transform_indices = @transform_4, window_bounds = array<i64: 1, 128>}, {pipeline_mode = #tpu.pipeline_mode<synchronous>, transform_indices = @transform_5, window_bounds = array<i64: 128, 128>}, {pipeline_mode = #tpu.pipeline_mode<synchronous>, transform_indices = @transform_6, window_bounds = array<i64: 1, 128>}, {transform_indices = @transform_7, window_bounds = array<i64: 16, 128>}]} {
    %c0_i32 = arith.constant 0 : i32
    %0 = arith.cmpi eq, %arg1, %c0_i32 : i32
    %1 = arith.extui %0 : i1 to i32
    %c0_i32_0 = arith.constant 0 : i32
    %2 = arith.cmpi ne, %1, %c0_i32_0 : i32
    scf.if %2 {
      %cst_9 = arith.constant 0.000000e+00 : f32
      %12 = vector.broadcast %cst_9 : f32 to vector<16x256xf32>
      %c0_10 = arith.constant 0 : index
      %c0_11 = arith.constant 0 : index
      %13 = vector.load %arg10[%c0_10, %c0_11] : memref<16x256xf32, #tpu.memory_space<vmem>>, vector<16x256xf32>
      tpu.vector_store %arg10[%c0_10, %c0_11], %12 {strides = array<i32>} : memref<16x256xf32, #tpu.memory_space<vmem>>, vector<16x256xf32>,
    } else {
    }
    %c0 = arith.constant 0 : index
    %c0_1 = arith.constant 0 : index
    %3 = vector.load %arg10[%c0, %c0_1] : memref<16x256xf32, #tpu.memory_space<vmem>>, vector<16x256xf32>
    %c0_2 = arith.constant 0 : index
    %c0_3 = arith.constant 0 : index
    %4 = vector.load %arg2[%c0_2, %c0_3] : memref<16x512xbf16, #tpu.memory_space<vmem>>, vector<16x512xbf16>
    %c0_4 = arith.constant 0 : index
    %c0_5 = arith.constant 0 : index
    %5 = vector.load %arg3[%c0_4, %c0_5] : memref<512x256xbf16, #tpu.memory_space<vmem>>, vector<512x256xbf16>
    %cst = arith.constant dense<0.000000e+00> : vector<16x256xf32>
    %6 = tpu.matmul %4, %5, %cst {dimension_numbers = #tpu.dot_dimension_numbers<[1], [0], [0], [1], [0, 0, 1, 1], [], []>} : vector<16x512xbf16>, vector<512x256xbf16>, vector<16x256xf32> -> vector<16x256xf32>
    %7 = arith.addf %3, %6 : vector<16x256xf32>
    %c0_6 = arith.constant 0 : index
    %c0_7 = arith.constant 0 : index
    %8 = vector.load %arg10[%c0_6, %c0_7] : memref<16x256xf32, #tpu.memory_space<vmem>>, vector<16x256xf32>
    tpu.vector_store %arg10[%c0_6, %c0_7], %7 {strides = array<i32>} : memref<16x256xf32, #tpu.memory_space<vmem>>, vector<16x256xf32>,
    %c1_i32 = arith.constant 1 : i32
    %9 = arith.cmpi eq, %arg1, %c1_i32 : i32
    %10 = arith.extui %9 : i1 to i32
    %c0_i32_8 = arith.constant 0 : i32
    %11 = arith.cmpi ne, %10, %c0_i32_8 : i32
    scf.if %11 {
      %c0_9 = arith.constant 0 : index
      %c0_10 = arith.constant 0 : index
      %12 = vector.load %arg10[%c0_9, %c0_10] : memref<16x256xf32, #tpu.memory_space<vmem>>, vector<16x256xf32>
      %c0_11 = arith.constant 0 : index
      %c0_12 = arith.constant 0 : index
      %13 = vector.load %arg4[%c0_11, %c0_12] : memref<1x256xf32, #tpu.memory_space<vmem>>, vector<1x256xf32>
      %14 = vector.broadcast %13 : vector<1x256xf32> to vector<16x256xf32>
      %15 = arith.addf %12, %14 : vector<16x256xf32>
      %16 = math.tanh %15 : vector<16x256xf32>
      %17 = arith.truncf %16 : vector<16x256xf32> to vector<16x256xbf16>
      %c0_13 = arith.constant 0 : index
      %c0_14 = arith.constant 0 : index
      %18 = vector.load %arg5[%c0_13, %c0_14] : memref<256x128xbf16, #tpu.memory_space<vmem>>, vector<256x128xbf16>
      %cst_15 = arith.constant dense<0.000000e+00> : vector<16x128xf32>
      %19 = tpu.matmul %17, %18, %cst_15 {dimension_numbers = #tpu.dot_dimension_numbers<[1], [0], [0], [1], [0, 0, 1, 1], [], []>} : vector<16x256xbf16>, vector<256x128xbf16>, vector<16x128xf32> -> vector<16x128xf32>
      %c0_16 = arith.constant 0 : index
      %c0_17 = arith.constant 0 : index
      %20 = vector.load %arg6[%c0_16, %c0_17] : memref<1x128xf32, #tpu.memory_space<vmem>>, vector<1x128xf32>
      %21 = vector.broadcast %20 : vector<1x128xf32> to vector<16x128xf32>
      %22 = arith.addf %19, %21 : vector<16x128xf32>
      %23 = math.tanh %22 : vector<16x128xf32>
      %24 = arith.truncf %23 : vector<16x128xf32> to vector<16x128xbf16>
      %c0_18 = arith.constant 0 : index
      %c0_19 = arith.constant 0 : index
      %25 = vector.load %arg7[%c0_18, %c0_19] : memref<128x128xbf16, #tpu.memory_space<vmem>>, vector<128x128xbf16>
      %cst_20 = arith.constant dense<0.000000e+00> : vector<16x128xf32>
      %26 = tpu.matmul %24, %25, %cst_20 {dimension_numbers = #tpu.dot_dimension_numbers<[1], [0], [0], [1], [0, 0, 1, 1], [], []>} : vector<16x128xbf16>, vector<128x128xbf16>, vector<16x128xf32> -> vector<16x128xf32>
      %c0_21 = arith.constant 0 : index
      %c0_22 = arith.constant 0 : index
      %27 = vector.load %arg8[%c0_21, %c0_22] : memref<1x128xf32, #tpu.memory_space<vmem>>, vector<1x128xf32>
      %28 = vector.broadcast %27 : vector<1x128xf32> to vector<16x128xf32>
      %29 = arith.addf %26, %28 : vector<16x128xf32>
      %c0_23 = arith.constant 0 : index
      %c0_24 = arith.constant 0 : index
      %30 = vector.load %arg9[%c0_23, %c0_24] : memref<16x128xf32, #tpu.memory_space<vmem>>, vector<16x128xf32>
      tpu.vector_store %arg9[%c0_23, %c0_24], %29 {strides = array<i32>} : memref<16x128xf32, #tpu.memory_space<vmem>>, vector<16x128xf32>,
    } else {
    }
    return
  }
  func.func @transform_0(%arg0: i32, %arg1: i32) -> (i32, i32) {
    %c0_i32 = arith.constant 0 : i32
    return %arg0, %arg1 : i32, i32
  }
  func.func @transform_1(%arg0: i32, %arg1: i32) -> (i32, i32) {
    %c0_i32 = arith.constant 0 : i32
    %c0_i32_0 = arith.constant 0 : i32
    return %arg1, %c0_i32 : i32, i32
  }
  func.func @transform_2(%arg0: i32, %arg1: i32) -> (i32, i32) {
    %c0_i32 = arith.constant 0 : i32
    %c0_i32_0 = arith.constant 0 : i32
    %c0_i32_1 = arith.constant 0 : i32
    return %c0_i32, %c0_i32_0 : i32, i32
  }
  func.func @transform_3(%arg0: i32, %arg1: i32) -> (i32, i32) {
    %c0_i32 = arith.constant 0 : i32
    %c0_i32_0 = arith.constant 0 : i32
    %c0_i32_1 = arith.constant 0 : i32
    return %c0_i32, %c0_i32_0 : i32, i32
  }
  func.func @transform_4(%arg0: i32, %arg1: i32) -> (i32, i32) {
    %c0_i32 = arith.constant 0 : i32
    %c0_i32_0 = arith.constant 0 : i32
    %c0_i32_1 = arith.constant 0 : i32
    return %c0_i32, %c0_i32_0 : i32, i32
  }
  func.func @transform_5(%arg0: i32, %arg1: i32) -> (i32, i32) {
    %c0_i32 = arith.constant 0 : i32
    %c0_i32_0 = arith.constant 0 : i32
    %c0_i32_1 = arith.constant 0 : i32
    return %c0_i32, %c0_i32_0 : i32, i32
  }
  func.func @transform_6(%arg0: i32, %arg1: i32) -> (i32, i32) {
    %c0_i32 = arith.constant 0 : i32
    %c0_i32_0 = arith.constant 0 : i32
    %c0_i32_1 = arith.constant 0 : i32
    return %c0_i32, %c0_i32_0 : i32, i32
  }
  func.func @transform_7(%arg0: i32, %arg1: i32) -> (i32, i32) {
    %c0_i32 = arith.constant 0 : i32
    %c0_i32_0 = arith.constant 0 : i32
    return %arg0, %c0_i32 : i32, i32
  }
}

module attributes {stable_mosaic.version = 11 : i64} {
  func.func @mlp_kernel(%arg0: i32, %arg1: i32, %arg2: memref<16x512xbf16, #tpu.memory_space<vmem>>, %arg3: memref<512x256xbf16, #tpu.memory_space<vmem>>, %arg4: memref<1x256xf32, #tpu.memory_space<vmem>>, %arg5: memref<256x128xbf16, #tpu.memory_space<vmem>>, %arg6: memref<1x128xf32, #tpu.memory_space<vmem>>, %arg7: memref<128x128xbf16, #tpu.memory_space<vmem>>, %arg8: memref<1x128xf32, #tpu.memory_space<vmem>>, %arg9: memref<16x128xf32, #tpu.memory_space<vmem>>, %arg10: memref<16x256xf32, #tpu.memory_space<vmem>>) attributes {dimension_semantics = [#tpu.dimension_semantics<parallel>, #tpu.dimension_semantics<arbitrary>], iteration_bounds = array<i64: 1, 2>, scalar_prefetch = 0 : i64, scratch_operands = 1 : i64, tpu.core_type = #tpu.core_type<tc>, window_params = [{transform_indices = @transform_0, window_bounds = array<i64: 16, 512>}, {transform_indices = @transform_1, window_bounds = array<i64: 512, 256>}, {pipeline_mode = #tpu.pipeline_mode<synchronous>, transform_indices = @transform_2, window_bounds = array<i64: 1, 256>}, {pipeline_mode = #tpu.pipeline_mode<synchronous>, transform_indices = @transform_3, window_bounds = array<i64: 256, 128>}, {pipeline_mode = #tpu.pipeline_mode<synchronous>, transform_indices = @transform_4, window_bounds = array<i64: 1, 128>}, {pipeline_mode = #tpu.pipeline_mode<synchronous>, transform_indices = @transform_5, window_bounds = array<i64: 128, 128>}, {pipeline_mode = #tpu.pipeline_mode<synchronous>, transform_indices = @transform_6, window_bounds = array<i64: 1, 128>}, {transform_indices = @transform_7, window_bounds = array<i64: 16, 128>}]} {
    %c0_i32 = arith.constant 0 : i32
    %0 = arith.cmpi eq, %arg1, %c0_i32 : i32
    %1 = arith.extui %0 : i1 to i32
    %c0_i32_0 = arith.constant 0 : i32
    %2 = arith.cmpi ne, %1, %c0_i32_0 : i32
    scf.if %2 {
      %cst_9 = arith.constant 0.000000e+00 : f32
      %12 = vector.broadcast %cst_9 : f32 to vector<16x256xf32>
      %c0_10 = arith.constant 0 : index
      %c0_11 = arith.constant 0 : index
      %13 = vector.load %arg10[%c0_10, %c0_11] : memref<16x256xf32, #tpu.memory_space<vmem>>, vector<16x256xf32>
      tpu.vector_store %arg10[%c0_10, %c0_11], %12 {strides = array<i32>} : memref<16x256xf32, #tpu.memory_space<vmem>>, vector<16x256xf32>,
    } else {
    }
    %c0 = arith.constant 0 : index
    %c0_1 = arith.constant 0 : index
    %3 = vector.load %arg10[%c0, %c0_1] : memref<16x256xf32, #tpu.memory_space<vmem>>, vector<16x256xf32>
    %c0_2 = arith.constant 0 : index
    %c0_3 = arith.constant 0 : index
    %4 = vector.load %arg2[%c0_2, %c0_3] : memref<16x512xbf16, #tpu.memory_space<vmem>>, vector<16x512xbf16>
    %c0_4 = arith.constant 0 : index
    %c0_5 = arith.constant 0 : index
    %5 = vector.load %arg3[%c0_4, %c0_5] : memref<512x256xbf16, #tpu.memory_space<vmem>>, vector<512x256xbf16>
    %cst = arith.constant dense<0.000000e+00> : vector<16x256xf32>
    %6 = tpu.matmul %4, %5, %cst {dimension_numbers = #tpu.dot_dimension_numbers<[1], [0], [0], [1], [0, 0, 1, 1], [], []>} : vector<16x512xbf16>, vector<512x256xbf16>, vector<16x256xf32> -> vector<16x256xf32>
    %7 = arith.addf %3, %6 : vector<16x256xf32>
    %c0_6 = arith.constant 0 : index
    %c0_7 = arith.constant 0 : index
    %8 = vector.load %arg10[%c0_6, %c0_7] : memref<16x256xf32, #tpu.memory_space<vmem>>, vector<16x256xf32>
    tpu.vector_store %arg10[%c0_6, %c0_7], %7 {strides = array<i32>} : memref<16x256xf32, #tpu.memory_space<vmem>>, vector<16x256xf32>,
    %c1_i32 = arith.constant 1 : i32
    %9 = arith.cmpi eq, %arg1, %c1_i32 : i32
    %10 = arith.extui %9 : i1 to i32
    %c0_i32_8 = arith.constant 0 : i32
    %11 = arith.cmpi ne, %10, %c0_i32_8 : i32
    scf.if %11 {
      %c0_9 = arith.constant 0 : index
      %c0_10 = arith.constant 0 : index
      %12 = vector.load %arg10[%c0_9, %c0_10] : memref<16x256xf32, #tpu.memory_space<vmem>>, vector<16x256xf32>
      %c0_11 = arith.constant 0 : index
      %c0_12 = arith.constant 0 : index
      %13 = vector.load %arg4[%c0_11, %c0_12] : memref<1x256xf32, #tpu.memory_space<vmem>>, vector<1x256xf32>
      %14 = vector.broadcast %13 : vector<1x256xf32> to vector<16x256xf32>
      %15 = arith.addf %12, %14 : vector<16x256xf32>
      %16 = math.tanh %15 : vector<16x256xf32>
      %17 = arith.truncf %16 : vector<16x256xf32> to vector<16x256xbf16>
      %c0_13 = arith.constant 0 : index
      %c0_14 = arith.constant 0 : index
      %18 = vector.load %arg5[%c0_13, %c0_14] : memref<256x128xbf16, #tpu.memory_space<vmem>>, vector<256x128xbf16>
      %cst_15 = arith.constant dense<0.000000e+00> : vector<16x128xf32>
      %19 = tpu.matmul %17, %18, %cst_15 {dimension_numbers = #tpu.dot_dimension_numbers<[1], [0], [0], [1], [0, 0, 1, 1], [], []>} : vector<16x256xbf16>, vector<256x128xbf16>, vector<16x128xf32> -> vector<16x128xf32>
      %c0_16 = arith.constant 0 : index
      %c0_17 = arith.constant 0 : index
      %20 = vector.load %arg6[%c0_16, %c0_17] : memref<1x128xf32, #tpu.memory_space<vmem>>, vector<1x128xf32>
      %21 = vector.broadcast %20 : vector<1x128xf32> to vector<16x128xf32>
      %22 = arith.addf %19, %21 : vector<16x128xf32>
      %23 = math.tanh %22 : vector<16x128xf32>
      %24 = arith.truncf %23 : vector<16x128xf32> to vector<16x128xbf16>
      %c0_18 = arith.constant 0 : index
      %c0_19 = arith.constant 0 : index
      %25 = vector.load %arg7[%c0_18, %c0_19] : memref<128x128xbf16, #tpu.memory_space<vmem>>, vector<128x128xbf16>
      %cst_20 = arith.constant dense<0.000000e+00> : vector<16x128xf32>
      %26 = tpu.matmul %24, %25, %cst_20 {dimension_numbers = #tpu.dot_dimension_numbers<[1], [0], [0], [1], [0, 0, 1, 1], [], []>} : vector<16x128xbf16>, vector<128x128xbf16>, vector<16x128xf32> -> vector<16x128xf32>
      %c0_21 = arith.constant 0 : index
      %c0_22 = arith.constant 0 : index
      %27 = vector.load %arg8[%c0_21, %c0_22] : memref<1x128xf32, #tpu.memory_space<vmem>>, vector<1x128xf32>
      %28 = vector.broadcast %27 : vector<1x128xf32> to vector<16x128xf32>
      %29 = arith.addf %26, %28 : vector<16x128xf32>
      %c0_23 = arith.constant 0 : index
      %c0_24 = arith.constant 0 : index
      %30 = vector.load %arg9[%c0_23, %c0_24] : memref<16x128xf32, #tpu.memory_space<vmem>>, vector<16x128xf32>
      tpu.vector_store %arg9[%c0_23, %c0_24], %29 {strides = array<i32>} : memref<16x128xf32, #tpu.memory_space<vmem>>, vector<16x128xf32>,
    } else {
    }
    return
  }
  func.func @transform_0(%arg0: i32, %arg1: i32) -> (i32, i32) {
    %c0_i32 = arith.constant 0 : i32
    return %arg0, %arg1 : i32, i32
  }
  func.func @transform_1(%arg0: i32, %arg1: i32) -> (i32, i32) {
    %c0_i32 = arith.constant 0 : i32
    %c0_i32_0 = arith.constant 0 : i32
    return %arg1, %c0_i32 : i32, i32
  }
  func.func @transform_2(%arg0: i32, %arg1: i32) -> (i32, i32) {
    %c0_i32 = arith.constant 0 : i32
    %c0_i32_0 = arith.constant 0 : i32
    %c0_i32_1 = arith.constant 0 : i32
    return %c0_i32, %c0_i32_0 : i32, i32
  }
  func.func @transform_3(%arg0: i32, %arg1: i32) -> (i32, i32) {
    %c0_i32 = arith.constant 0 : i32
    %c0_i32_0 = arith.constant 0 : i32
    %c0_i32_1 = arith.constant 0 : i32
    return %c0_i32, %c0_i32_0 : i32, i32
  }
  func.func @transform_4(%arg0: i32, %arg1: i32) -> (i32, i32) {
    %c0_i32 = arith.constant 0 : i32
    %c0_i32_0 = arith.constant 0 : i32
    %c0_i32_1 = arith.constant 0 : i32
    return %c0_i32, %c0_i32_0 : i32, i32
  }
  func.func @transform_5(%arg0: i32, %arg1: i32) -> (i32, i32) {
    %c0_i32 = arith.constant 0 : i32
    %c0_i32_0 = arith.constant 0 : i32
    %c0_i32_1 = arith.constant 0 : i32
    return %c0_i32, %c0_i32_0 : i32, i32
  }
  func.func @transform_6(%arg0: i32, %arg1: i32) -> (i32, i32) {
    %c0_i32 = arith.constant 0 : i32
    %c0_i32_0 = arith.constant 0 : i32
    %c0_i32_1 = arith.constant 0 : i32
    return %c0_i32, %c0_i32_0 : i32, i32
  }
  func.func @transform_7(%arg0: i32, %arg1: i32) -> (i32, i32) {
    %c0_i32 = arith.constant 0 : i32
    %c0_i32_0 = arith.constant 0 : i32
    return %arg0, %c0_i32 : i32, i32
  }
}

</mosaic_0001>

<bundles_post_ra>
// kernel: tpu_custom_call.1
= control target key start
LH: loop header
LB: loop body
LE: loop exit
PB: predicated region body
PF: predicated region fallthrough
CT: control target
= control target key end

     0   :  { %s2265_s0 = inlined_call_operand.hbm [shape: bf16[16,1024], index: 0, kind: input, shape index: {}]   ;;  %s2266_s1 = inlined_call_operand.hbm [shape: bf16[1024,256], index: 1, kind: input, shape index: {}]   ;;  %s2267_s2 = inlined_call_operand.vmem [shape: f32[1,256], index: 2, kind: input, shape index: {}]   ;;  %s2268_s3 = inlined_call_operand.hbm [shape: bf16[256,128], index: 3, kind: input, shape index: {}]   ;;  %s2269_s4 = inlined_call_operand.vmem [shape: f32[1,128], index: 4, kind: input, shape index: {}]   ;;  %s2270_s5 = inlined_call_operand.hbm [shape: bf16[128,128], index: 5, kind: input, shape index: {}]   ;;  %s2271_s6 = inlined_call_operand.vmem [shape: f32[1,128], index: 6, kind: input, shape index: {}]   ;;  %s2272_s7 = inlined_call_operand.hbm [shape: f32[16,128], index: 7, kind: output, shape index: {}]  }
   0x1   :  { %2277 = sst [smem:[#allocation20_spill]] %s2265_s0 }
   0x2   :  { %2278 = sst [smem:[#allocation21_spill]] %s2268_s3 }
   0x3   :  { %2279 = sst [smem:[#allocation22_spill]] %s2270_s5 }
   0x4   :  { %2280 = sst [smem:[#allocation23_spill]] %s2272_s7 }
   0x5   :  { %12 = vsyncpa [#allocation4], 0 }
   0x6   :  { %14 = vsyncpa [#allocation4 + $0x1], 0 }
   0x7   :  { %15 = vsyncpa [#allocation7], 0 }
   0x8   :  { %17 = vsyncpa [#allocation7 + $0x1], 0 }
   0x9   :  { %18 = vsyncpa [#allocation10], 0 }
   0xa   :  { %19 = vsyncpa [#allocation5], 0  ;;  %s2003_s24 = smov 0   ;;  %s2005_s25 = smov 0  }
   0xb   :  { %s2007_s26 = smov 0   ;;  %s2009_s27 = smov 0  }
   0xc   :  { %s2011_s28 = smov 0   ;;  %s2013_s29 = smov 0  }
   0xd LB: > { %2281 = sst [smem:[#allocation17_spill]] %s1932_s26  ;;  %s2032_s30 = sadd.s32 4294967295, %s1944_s29   ;;  %s1944_s29 = sphi %s2013_s29, %s25_s29   ;;  %s1940_s28 = sphi %s2011_s28, %s2303_s28   ;;  %s1936_s27 = sphi %s2009_s27, %s2302_s27   ;;  %s1932_s26 = sphi %s2007_s26, %s2298_s26   ;;  %s1928_s25 = sphi %s2005_s25, %s2301_s25   ;;  %s1924_s24 = sphi %s2003_s24, %s2300_s24  }
   0xe   : > { %s46_s8 = sadd.s32 1, %s1932_s26  ;;  %p53_p0 = scmp.ne.s32.totalorder %s1932_s26, %s1928_s25 }
   0xf   : > { %p54_p1 = scmp.eq.s32.totalorder %s1944_s29, 0  ;;  %p59_p2 = scmp.ne.s32.totalorder %s1928_s25, %s1924_s24 }
  0x10   : > { %p2273_p3 = scmp.eq.s32.totalorder %s2032_s30, 0  ;;  %p1338_p5 = scmp.ge.s32.totalorder %s1944_s29, 1 }
  0x11   : > { %p55_p4 = por %p54_p1, %p53_p0  ;;  %p227_p7 = scmp.lt.s32.totalorder %s1944_s29, 3 }
  0x12   : > { %p2043_p6 = por %p2273_p3, %p59_p2  ;;  %s1946_s11 = smov [#allocation8]  }
  0x13   : > { %p2048_p8 = pnand %p1338_p5, %p227_p7  ;;  %s242_s12 = sshll.u32 %s1946_s11, 4  ;;  %s243_s12 = int_to_ptr.vmem [resolvable:$true] %s242_s12 }
  0x14   : > { %s2282_s9 = scalar_select %p2043_p6, 1, 0 }
  0x15   : > { %p1524_p9 = pneg %p2048_p8  ;;  %p1540_p10 = scmp.lt.s32.totalorder %s1944_s29, 2 }
  0x16   : > { %s1947_s15 = smov [#allocation9]   ;;  %s1757_s17 = scalar_lea.vmem %s243_s12, 2048 }
  0x17   : > { %p2057_p11 = pnand %p1524_p9, %p2273_p3  ;;  %p2061_p12 = pnand %p1540_p10, %p55_p4 }
  0x18   : > { %s258_s16 = sshll.u32 %s1947_s15, 4  ;;  %p1758_p0 = scmp.ne.s32.totalorder %s243_s12, %s1757_s17  ;;  %s259_s16 = int_to_ptr.vmem [resolvable:$true] %s258_s16 }
  0x19   : > { %p1748_p13 = pneg %p2057_p11  ;;  %p1765_p5 = scmp.lt.s32.totalorder %s243_s12, %s243_s12 }
  0x1a   : > { %p1766_p7 = scmp.lt.s32.totalorder %s1757_s17, %s1757_s17 }
  0x1b   : > { %p1760_p1 = pnand %p1758_p0, %p1748_p13 }
  0x1c   : > { %p1767_p9 = por %p1766_p7, %p1765_p5 }
  0x1d   : > { %p1761_p2 = pneg %p1760_p1 }
  0x1f   : > { %p1768_p3 = pnand %p1767_p9, %p1761_p2 }
  0x21   : > { %1771 = shalt.err (!%p1768_p3)
}
  0x22   : > { %s1948_s18 = smov 64   ;;  %s1949_s19 = smov 4  }
  0x23   : > { %s2286_s3 = sld [smem:[#allocation21_spill]]  ;;  %s1783_s22 = scalar_lea.vmem %s259_s16, 1024 }
  0x24   : > { %p1784_p4 = scmp.ne.s32.totalorder %s259_s16, %s1783_s22  ;;  %p1791_p1 = scmp.lt.s32.totalorder %s259_s16, %s259_s16 }
  0x25   : > { %p1792_p6 = scmp.lt.s32.totalorder %s1783_s22, %s1783_s22 }
  0x26   : > { %p1786_p10 = pnand %p1784_p4, %p1748_p13 }
  0x27   : > { %p1793_p5 = por %p1792_p6, %p1791_p1 }
  0x28   : > { %p1787_p0 = pneg %p1786_p10 }
  0x29   : > { %1527 = dma.hbm_to_vmem [thread:$0]  (!%p2057_p11), %s2286_s3, 2048, %s243_s12, [#allocation7], %s1948_s18, %s1948_s18, %s1949_s19  }
  0x2a   : > { %p1794_p2 = pnand %p1793_p5, %p1787_p0 }
  0x2c   : > { %1797 = shalt.err (!%p1794_p2)
}
  0x2d   : > { %s2287_s5 = sld [smem:[#allocation22_spill]]  ;;  %s2084_s11 = sand.u32 1, %s1932_s26  }
  0x2e   : > { %s34_s12 = sadd.s32 1, %s1940_s28  ;;  %s1342_s15 = sshll.u32 %s2084_s11, 5 }
  0x2f   : > { %p35_p3 = scmp.ge.s32.totalorder %s34_s12, 2  ;;  %s1454_s13 = sshll.u32 %s1940_s28, 8 }
  0x30   : > { %s2289_s0 = sld [smem:[#allocation20_spill]]  ;;  %s279_s22 = scalar_lea.vmem [#allocation3], %s1342_s15 }
  0x31   : > { %s2305_s12 = smov (%p35_p3, %s34_s12), 0  ;;  %s289_s23 = sshll.u32 %s279_s22, 4  ;;  %s290_s23 = int_to_ptr.vmem [resolvable:$true] %s289_s23 }
  0x32   : > { %2288 = sst [smem:[#allocation18_spill]] %s2305_s12  ;;  %s1811_s24 = scalar_lea.vmem %s290_s23, 512 }
  0x33   : > { %1530 = dma.hbm_to_vmem [thread:$0]  (!%p2057_p11), %s2287_s5, 1024, %s259_s16, [#allocation10], %s1948_s18, %s1948_s18, %s1949_s19  }
  0x34   : > { %s42_s16 = ssub.s32 %s1940_s28, %s2305_s12  ;;  %s276_s19 = scalar_lea.sflag [#allocation4], %s2084_s11 }
  0x35   : > { %p44_p6 = scmp.eq.s32.totalorder %s42_s16, 0  ;;  %p1800_p11 = pneg %p2061_p12 }
  0x36   : > { %s2094_s21 = scalar_lea.hbm %s2289_s0, %s1454_s13  ;;  %p1812_p13 = scmp.ne.s32.totalorder %s290_s23, %s1811_s24 }
  0x37   : > { %s2101_s18 = scalar_select %p44_p6, %s1932_s26, %s46_s8  }
  0x38   : > { %p1814_p7 = pnand %p1812_p13, %p1800_p11  ;;  %s1950_s17 = smov [#allocation3]  }
  0x39   : > { %2290 = sst [smem:[#allocation19_spill]] %s2101_s18  ;;  %s1816_s13 = sshll.u32 %s1950_s17, 4  ;;  %s1817_s13 = int_to_ptr.vmem [resolvable:$false] %s1816_s13 }
  0x3a   : > { %p1815_p9 = pneg %p1814_p7  ;;  %s1818_s15 = scalar_lea.vmem %s1817_s13, 1024 }
  0x3b   : > { %p1819_p4 = scmp.lt.s32.totalorder %s290_s23, %s1817_s13  ;;  %p1820_p10 = scmp.lt.s32.totalorder %s1818_s15, %s1811_s24 }
  0x3d   : > { %p1821_p0 = por %p1820_p10, %p1819_p4 }
  0x3f   : > { %p1822_p1 = pnand %p1821_p0, %p1815_p9 }
  0x41   : > { %1825 = shalt.err (!%p1822_p1)
}
  0x42   : > { %s1951_s8 = smov 512   ;;  %s1952_s20 = smov 256  }
  0x43   : > { %s1953_s22 = smov 16   ;;  %s299_s16 = sand.u32 1, %s1944_s29  }
  0x44   : > { %1534 = dma.hbm_to_vmem [thread:$0]  (!%p2061_p12), %s2094_s21, 512, %s290_s23, %s276_s19, %s1951_s8, %s1952_s20, %s1953_s22  }
  0x45   : > { %s1345_s17 = sshll.u32 %s2084_s11, 9  ;;  %s1456_s0 = sshll.u32 %s1940_s28, 13 }
  0x46   : > { %s303_s3 = scalar_lea.vmem [#allocation6], %s1345_s17  ;;  %s310_s5 = scalar_lea.hbm %s2266_s1, %s1456_s0 }
  0x47   : > { %s311_s13 = sshll.u32 %s303_s3, 4  ;;  %s300_s12 = scalar_lea.sflag [#allocation7], %s299_s16  ;;  %s312_s13 = int_to_ptr.vmem [resolvable:$true] %s311_s13 }
  0x48   : > { %s1839_s18 = scalar_lea.vmem %s312_s13, 8192  ;;  %s1954_s26 = smov [#allocation6]  }
  0x49   : > { %p1840_p5 = scmp.ne.s32.totalorder %s312_s13, %s1839_s18  ;;  %s1844_s7 = sshll.u32 %s1954_s26, 4  ;;  %s1845_s7 = int_to_ptr.vmem [resolvable:$false] %s1844_s7 }
  0x4a   : > { %s1846_s21 = scalar_lea.vmem %s1845_s7, 16384  ;;  %p1847_p6 = scmp.lt.s32.totalorder %s312_s13, %s1845_s7 }
  0x4b   : > { %p1842_p2 = pnand %p1840_p5, %p1800_p11  ;;  %p1848_p13 = scmp.lt.s32.totalorder %s1846_s21, %s1839_s18 }
  0x4d   : > { %p1843_p3 = pneg %p1842_p2  ;;  %p1849_p7 = por %p1848_p13, %p1847_p6 }
  0x4f   : > { %p1850_p9 = pnand %p1849_p7, %p1843_p3 }
  0x51   : > { %1853 = shalt.err (!%p1850_p9)
}
  0x52   : > { %s1955_s3 = smov 128   ;;  %s1956_s0 = smov 8  }
  0x53   : > { %1537 = dma.hbm_to_vmem [thread:$0]  (!%p2061_p12), %s310_s5, 8192, %s312_s13, %s300_s12, %s1955_s3, %s1955_s3, %s1956_s0  }
  0x54   : > { %323 = sbr.rel (%p2048_p8) target bundleno = 853 (0x355), region = 48  ;;  %s325_s11 = sand.u32 (!%p2048_p8), 1, %s1928_s25  }
  0x55   : > { %s1350_s23 = sshll.u32 (!%p2048_p8), %s325_s11, 5  ;;  %s326_s26 = scalar_lea.sflag (!%p2048_p8), [#allocation4], %s325_s11 }
  0x56   : > { %s2126_s19 = scalar_lea.vmem (!%p2048_p8), [#allocation3], %s1350_s23  ;;  %p2291_p11 = scmp.ne.s32.totalorder (!%p2048_p8), %s2282_s9, 0 }
  0x59   : > { %1903 = dma.done.wait (%p2291_p11), %s326_s26, 512  }
  0x5a   : > { %1905 = vsyncadd (%p2291_p11), %s326_s26, 4294966784  ;;  %s334_s7 = sand.u32 1, %s2032_s30   ;;  %s1351_s14 = sshll.u32 %s325_s11, 9 }
  0x5b   : > { %s335_s5 = scalar_lea.sflag [#allocation7], %s334_s7  ;;  %s2133_s12 = scalar_lea.vmem [#allocation6], %s1351_s14 }
  0x5c   : > { %1907 = dma.done.wait (%p2291_p11), %s335_s5, 8192  }
  0x5d   : > { %1909 = vsyncadd (%p2291_p11), %s335_s5, 4294959104  ;;  %p2292_p8 = scmp.eq.s32.totalorder %s2032_s30, 0 }
  0x5f   : > { %1911 = dma.done.wait (%p2292_p8), [#allocation7], 2048   ;;  %p2293_p12 = pmov %p2292_p8 }
  0x60   : > { %p2294_p4 = pmov %p2292_p8 }
  0x61   : > { %1913 = vsyncadd (%p2293_p12), [#allocation7], 4294965248 }
  0x62   : > { %1915 = dma.done.wait (%p2294_p4), [#allocation10], 1024   ;;  %p2295_p10 = pmov %p2294_p4 }
  0x63   : > { %p1354_p0 = scmp.ne.s32.totalorder %s1936_s27, 0 }
  0x64   : > { %1917 = vsyncadd (%p2295_p10), [#allocation10], 4294966272 }
  0x65   : > { %385 = sbr.rel (%p1354_p0) target bundleno = 109 (0x6d), region = 68 }
  0x6a   : > { %v1957_v0 = vmov 0.0  }
  0x6b   : > { %386 = vst [vmem:[#allocation2 + $0x10] sm:$0xff] %v1957_v0  ;;  %387 = vst [vmem:[#allocation2] sm:$0xff] %v1957_v0 }
  0x6c   : > { %388 = vst [vmem:[#allocation2 + $0x18] sm:$0xff] %v1957_v0  ;;  %389 = vst [vmem:[#allocation2 + $0x8] sm:$0xff] %v1957_v0 }
  0x6d PF: > { %v1608_v1 = vld [vmem:[%s2133_s12 + $0x74] ss:$8 sps:$4 sm:$0xff]   ;;  %v1612_v3 = vld [vmem:[%s2133_s12 + $0x70] ss:$8 sps:$4 sm:$0xff]   ;;  %v1614_v5 = vld [vmem:[%s2133_s12 + $0x64] ss:$8 sps:$4 sm:$0xff]  }
  0x6e   : > { %v1610_v2 = vld [vmem:[%s2133_s12 + $0x174] ss:$8 sps:$4 sm:$0xff]   ;;  %802 = vmatprep.subr.bf16.mxu0 %v1608_v1  ;;  %v1613_v4 = vld [vmem:[%s2133_s12 + $0x170] ss:$8 sps:$4 sm:$0xff]   ;;  %v1616_v6 = vld [vmem:[%s2133_s12 + $0x164] ss:$8 sps:$4 sm:$0xff]  }
  0x6f   : > { %845 = vmatprep.subr.bf16.mxu1 %v1610_v2  ;;  %803 = vmatpush1.bf16.msra.mxu0 %v1612_v3  ;;  %v1618_v7 = vld [vmem:[%s2133_s12 + $0x60] ss:$8 sps:$4 sm:$0xff]   ;;  %v1620_v9 = vld [vmem:[%s2133_s12 + $0x54] ss:$8 sps:$4 sm:$0xff]   ;;  %v1624_v11 = vld [vmem:[%s2133_s12 + $0x50] ss:$8 sps:$4 sm:$0xff]  }
  0x70   : > { %846 = vmatpush1.bf16.msra.mxu1 %v1613_v4  ;;  %804 = vmatprep.subr.bf16.mxu0 %v1614_v5  ;;  %v1619_v8 = vld [vmem:[%s2133_s12 + $0x160] ss:$8 sps:$4 sm:$0xff]   ;;  %v1622_v10 = vld [vmem:[%s2133_s12 + $0x154] ss:$8 sps:$4 sm:$0xff]   ;;  %v1625_v12 = vld [vmem:[%s2133_s12 + $0x150] ss:$8 sps:$4 sm:$0xff]  }
  0x71   : > { %847 = vmatprep.subr.bf16.mxu1 %v1616_v6  ;;  %v1626_v13 = vld [vmem:[%s2133_s12 + $0x44] ss:$8 sps:$4 sm:$0xff]   ;;  %v1630_v15 = vld [vmem:[%s2133_s12 + $0x40] ss:$8 sps:$4 sm:$0xff]   ;;  %v1632_v17 = vld [vmem:[%s2133_s12 + $0x34] ss:$8 sps:$4 sm:$0xff]  }
  0x72   : > { %v1628_v14 = vld [vmem:[%s2133_s12 + $0x144] ss:$8 sps:$4 sm:$0xff]   ;;  %v1631_v16 = vld [vmem:[%s2133_s12 + $0x140] ss:$8 sps:$4 sm:$0xff]   ;;  %v1634_v18 = vld [vmem:[%s2133_s12 + $0x134] ss:$8 sps:$4 sm:$0xff]  }
  0x73   : > { %805 = vmatpush1.bf16.msra.mxu0 %v1618_v7  ;;  %v1636_v19 = vld [vmem:[%s2133_s12 + $0x30] ss:$8 sps:$4 sm:$0xff]   ;;  %v1638_v21 = vld [vmem:[%s2133_s12 + $0x24] ss:$8 sps:$4 sm:$0xff]   ;;  %v1642_v23 = vld [vmem:[%s2133_s12 + $0x20] ss:$8 sps:$4 sm:$0xff]  }
  0x74   : > { %848 = vmatpush1.bf16.msra.mxu1 %v1619_v8  ;;  %806 = vmatprep.subr.bf16.mxu0 %v1620_v9  ;;  %v1637_v20 = vld [vmem:[%s2133_s12 + $0x130] ss:$8 sps:$4 sm:$0xff]   ;;  %v1640_v22 = vld [vmem:[%s2133_s12 + $0x124] ss:$8 sps:$4 sm:$0xff]   ;;  %v1643_v24 = vld [vmem:[%s2133_s12 + $0x120] ss:$8 sps:$4 sm:$0xff]  }
  0x75   : > { %849 = vmatprep.subr.bf16.mxu1 %v1622_v10  ;;  %v1644_v25 = vld [vmem:[%s2133_s12 + $0x14] ss:$8 sps:$4 sm:$0xff]   ;;  %v1648_v27 = vld [vmem:[%s2133_s12 + $0x10] ss:$8 sps:$4 sm:$0xff]   ;;  %v1650_v29 = vld [vmem:[%s2133_s12 + $0x4] ss:$8 sps:$4 sm:$0xff]  }
  0x76   : > { %v1646_v26 = vld [vmem:[%s2133_s12 + $0x114] ss:$8 sps:$4 sm:$0xff]   ;;  %v1649_v28 = vld [vmem:[%s2133_s12 + $0x110] ss:$8 sps:$4 sm:$0xff]   ;;  %v1652_v30 = vld [vmem:[%s2133_s12 + $0x104] ss:$8 sps:$4 sm:$0xff]  }
  0x77   : > { %807 = vmatpush1.bf16.msra.mxu0 %v1624_v11  ;;  %v1654_v31 = vld [vmem:[%s2133_s12] ss:$8 sps:$4 sm:$0xff]   ;;  %v1656_v33 = vld [vmem:[%s2133_s12 + $0xf4] ss:$8 sps:$4 sm:$0xff]   ;;  %v1660_v35 = vld [vmem:[%s2133_s12 + $0xf0] ss:$8 sps:$4 sm:$0xff]  }
  0x78   : > { %850 = vmatpush1.bf16.msra.mxu1 %v1625_v12  ;;  %808 = vmatprep.subr.bf16.mxu0 %v1626_v13  ;;  %v1655_v32 = vld [vmem:[%s2133_s12 + $0x100] ss:$8 sps:$4 sm:$0xff]   ;;  %v1658_v34 = vld [vmem:[%s2133_s12 + $0x1f4] ss:$8 sps:$4 sm:$0xff]   ;;  %v1661_v36 = vld [vmem:[%s2133_s12 + $0x1f0] ss:$8 sps:$4 sm:$0xff]  }
  0x79   : > { %851 = vmatprep.subr.bf16.mxu1 %v1628_v14  ;;  %v1662_v37 = vld [vmem:[%s2133_s12 + $0xe4] ss:$8 sps:$4 sm:$0xff]   ;;  %v1666_v39 = vld [vmem:[%s2133_s12 + $0xe0] ss:$8 sps:$4 sm:$0xff]   ;;  %v1668_v41 = vld [vmem:[%s2133_s12 + $0xd4] ss:$8 sps:$4 sm:$0xff]  }
  0x7a   : > { %v1664_v38 = vld [vmem:[%s2133_s12 + $0x1e4] ss:$8 sps:$4 sm:$0xff]   ;;  %v1667_v40 = vld [vmem:[%s2133_s12 + $0x1e0] ss:$8 sps:$4 sm:$0xff]   ;;  %v1670_v42 = vld [vmem:[%s2133_s12 + $0x1d4] ss:$8 sps:$4 sm:$0xff]  }
  0x7b   : > { %809 = vmatpush1.bf16.msra.mxu0 %v1630_v15  ;;  %v1672_v43 = vld [vmem:[%s2133_s12 + $0xd0] ss:$8 sps:$4 sm:$0xff]   ;;  %v1674_v45 = vld [vmem:[%s2133_s12 + $0xc4] ss:$8 sps:$4 sm:$0xff]   ;;  %v1678_v47 = vld [vmem:[%s2133_s12 + $0xc0] ss:$8 sps:$4 sm:$0xff]  }
  0x7c   : > { %852 = vmatpush1.bf16.msra.mxu1 %v1631_v16  ;;  %810 = vmatprep.subr.bf16.mxu0 %v1632_v17  ;;  %v1673_v44 = vld [vmem:[%s2133_s12 + $0x1d0] ss:$8 sps:$4 sm:$0xff]   ;;  %v1676_v46 = vld [vmem:[%s2133_s12 + $0x1c4] ss:$8 sps:$4 sm:$0xff]   ;;  %v1679_v49 = vld [vmem:[%s2133_s12 + $0x1c0] ss:$8 sps:$4 sm:$0xff]  }
  0x7d   : > { %853 = vmatprep.subr.bf16.mxu1 %v1634_v18  ;;  %v1706_v48 = vld [vmem:[%s2126_s19 + $0x4] ss:$16 sps:$4 sm:$0xff]   ;;  %v1709_v52 = vld [vmem:[%s2126_s19 + $0xc] ss:$16 sps:$4 sm:$0xff]   ;;  %v1684_v53 = vld [vmem:[%s2133_s12 + $0xb0] ss:$8 sps:$4 sm:$0xff]  }
  0x7e   : > { %v1680_v50 = vld [vmem:[%s2133_s12 + $0xb4] ss:$8 sps:$4 sm:$0xff]   ;;  %834 = vmatprep.mubr.bf16.mxu0 %v1706_v48  ;;  %877 = vmatprep.mubr.bf16.mxu1 %v1709_v52  ;;  %v1685_v54 = vld [vmem:[%s2133_s12 + $0x1b0] ss:$8 sps:$4 sm:$0xff]   ;;  %v1686_v55 = vld [vmem:[%s2133_s12 + $0xa4] ss:$8 sps:$4 sm:$0xff]  }
  0x7f   : > { %811 = vmatpush1.bf16.msra.mxu0 %v1636_v19  ;;  %v1682_v51 = vld [vmem:[%s2133_s12 + $0x1b4] ss:$8 sps:$4 sm:$0xff]   ;;  %v1688_v56 = vld [vmem:[%s2133_s12 + $0x1a4] ss:$8 sps:$4 sm:$0xff]   ;;  %v1690_v57 = vld [vmem:[%s2133_s12 + $0xa0] ss:$8 sps:$4 sm:$0xff]  }
  0x80   : > { %854 = vmatpush1.bf16.msra.mxu1 %v1637_v20  ;;  %812 = vmatprep.subr.bf16.mxu0 %v1638_v21  ;;  %v1691_v58 = vld [vmem:[%s2133_s12 + $0x1a0] ss:$8 sps:$4 sm:$0xff]   ;;  %v1692_v59 = vld [vmem:[%s2133_s12 + $0x94] ss:$8 sps:$4 sm:$0xff]   ;;  %v1696_v61 = vld [vmem:[%s2133_s12 + $0x90] ss:$8 sps:$4 sm:$0xff]  }
  0x81   : > { %855 = vmatprep.subr.bf16.mxu1 %v1640_v22  ;;  %v1694_v60 = vld [vmem:[%s2133_s12 + $0x194] ss:$8 sps:$4 sm:$0xff]   ;;  %v1697_v62 = vld [vmem:[%s2133_s12 + $0x190] ss:$8 sps:$4 sm:$0xff]   ;;  %v1698_v63 = vld [vmem:[%s2133_s12 + $0x84] ss:$8 sps:$4 sm:$0xff]  }
  0x82   : > { %v1700_v0 = vld [vmem:[%s2133_s12 + $0x184] ss:$8 sps:$4 sm:$0xff]   ;;  %v1702_v1 = vld [vmem:[%s2133_s12 + $0x80] ss:$8 sps:$4 sm:$0xff]   ;;  %v390_v6 = vld [vmem:[#allocation2 + $0x10] sm:$0xff]  ;;  %p1423_p1 = scmp.ne.s32.totalorder %s1936_s27, 1 }
  0x83   : > { %813 = vmatpush1.bf16.msra.mxu0 %v1642_v23  ;;  %v1703_v2 = vld [vmem:[%s2133_s12 + $0x180] ss:$8 sps:$4 sm:$0xff]   ;;  %v392_v15 = vld [vmem:[#allocation2 + $0x18] sm:$0xff] }
  0x84   : > { %856 = vmatpush1.bf16.msra.mxu1 %v1643_v24  ;;  %814 = vmatprep.subr.bf16.mxu0 %v1644_v25  ;;  %v1704_v3 = vld [vmem:[%s2126_s19] ss:$16 sps:$4 sm:$0xff]   ;;  %v1707_v4 = vld [vmem:[%s2126_s19 + $0x8] ss:$16 sps:$4 sm:$0xff]  }
  0x85   : > { %857 = vmatprep.subr.bf16.mxu1 %v1646_v26  ;;  %v391_v10 = vld [vmem:[#allocation2] sm:$0xff]  ;;  %v393_v20 = vld [vmem:[#allocation2 + $0x8] sm:$0xff] }
  0x87   : > { %815 = vmatpush1.bf16.msra.mxu0 %v1648_v27 }
  0x88   : > { %858 = vmatpush1.bf16.msra.mxu1 %v1649_v28  ;;  %816 = vmatprep.subr.bf16.mxu0 %v1650_v29 }
  0x89   : > { %859 = vmatprep.subr.bf16.mxu1 %v1652_v30 }
  0x8b   : > { %817 = vmatpush1.bf16.msra.mxu0 %v1654_v31 }
  0x8c   : > { %860 = vmatpush1.bf16.msra.mxu1 %v1655_v32  ;;  %818 = vmatprep.subr.bf16.mxu0 %v1656_v33 }
  0x8d   : > { %861 = vmatprep.subr.bf16.mxu1 %v1658_v34 }
  0x8f   : > { %819 = vmatpush2.bf16.msra.mxu0 %v1660_v35 }
  0x90   : > { %862 = vmatpush2.bf16.msra.mxu1 %v1661_v36  ;;  %820 = vmatprep.subr.bf16.mxu0 %v1662_v37 }
  0x91   : > { %863 = vmatprep.subr.bf16.mxu1 %v1664_v38 }
  0x93   : > { %821 = vmatpush2.bf16.msra.mxu0 %v1666_v39 }
  0x94   : > { %864 = vmatpush2.bf16.msra.mxu1 %v1667_v40  ;;  %822 = vmatprep.subr.bf16.mxu0 %v1668_v41 }
  0x95   : > { %865 = vmatprep.subr.bf16.mxu1 %v1670_v42 }
  0x97   : > { %823 = vmatpush2.bf16.msra.mxu0 %v1672_v43 }
  0x98   : > { %866 = vmatpush2.bf16.msra.mxu1 %v1673_v44  ;;  %824 = vmatprep.subr.bf16.mxu0 %v1674_v45 }
  0x99   : > { %867 = vmatprep.subr.bf16.mxu1 %v1676_v46 }
  0x9b   : > { %825 = vmatpush2.bf16.msra.mxu0 %v1678_v47 }
  0x9c   : > { %868 = vmatpush2.bf16.msra.mxu1 %v1679_v49  ;;  %826 = vmatprep.subr.bf16.mxu0 %v1680_v50 }
  0x9d   : > { %869 = vmatprep.subr.bf16.mxu1 %v1682_v51 }
  0x9f   : > { %827 = vmatpush2.bf16.msra.mxu0 %v1684_v53 }
  0xa0   : > { %870 = vmatpush2.bf16.msra.mxu1 %v1685_v54  ;;  %828 = vmatprep.subr.bf16.mxu0 %v1686_v55 }
  0xa1   : > { %871 = vmatprep.subr.bf16.mxu1 %v1688_v56 }
  0xa3   : > { %829 = vmatpush2.bf16.msra.mxu0 %v1690_v57 }
  0xa4   : > { %872 = vmatpush2.bf16.msra.mxu1 %v1691_v58  ;;  %830 = vmatprep.subr.bf16.mxu0 %v1692_v59 }
  0xa5   : > { %873 = vmatprep.subr.bf16.mxu1 %v1694_v60 }
  0xa7   : > { %831 = vmatpush2.bf16.msra.mxu0 %v1696_v61 }
  0xa8   : > { %874 = vmatpush2.bf16.msra.mxu1 %v1697_v62  ;;  %832 = vmatprep.subr.bf16.mxu0 %v1698_v63 }
  0xa9   : > { %875 = vmatprep.subr.bf16.mxu1 %v1700_v0 }
  0xab   : > { %833 = vmatpush2.bf16.msra.mxu0 %v1702_v1 }
  0xac   : > { %876 = vmatpush2.bf16.msra.mxu1 %v1703_v2 }
  0xae   : > { %835 = vmatmul.mubr.bf16.vlgmr.msra.gmra.mxu0 %v1704_v3 }
  0xaf   : > { %878 = vmatmul.mubr.bf16.vlgmr.msra.gmra.mxu1 %v1707_v4 }
 0x16e   : > { %v836_v5 = vpop.f32.mrf.mxu0 }
 0x16f   : > { %v879_v7 = vpop.f32.mrf.mxu1 }
 0x170   : > { %v880_v8 = vadd.f32 %v879_v7, %v836_v5  ;;  %v838_v9 = vpop.f32.mrf.mxu0 }
 0x171   : > { %v881_v11 = vpop.f32.mrf.mxu1 }
 0x172   : > { %v888_v12 = vadd.f32 %v880_v8, %v390_v6  ;;  %v882_v13 = vadd.f32 %v881_v11, %v838_v9  ;;  %v840_v14 = vpop.f32.mrf.mxu0 }
 0x173   : > { %v883_v16 = vpop.f32.mrf.mxu1 }
 0x174   : > { %892 = vst [vmem:[#allocation2 + $0x10] sm:$0xff] %v888_v12  ;;  %v889_v17 = vadd.f32 %v882_v13, %v391_v10  ;;  %v884_v18 = vadd.f32 %v883_v16, %v840_v14  ;;  %v842_v19 = vpop.f32.mrf.mxu0 }
 0x175   : > { %v885_v21 = vpop.f32.mrf.mxu1 }
 0x176   : > { %893 = vst [vmem:[#allocation2] sm:$0xff] %v889_v17  ;;  %v890_v22 = vadd.f32 %v884_v18, %v392_v15  ;;  %v886_v23 = vadd.f32 %v885_v21, %v842_v19  ;;  %899 = sbr.rel (%p1423_p1) target bundleno = 831 (0x33f), region = 72 }
 0x178   : > { %894 = vst [vmem:[#allocation2 + $0x18] sm:$0xff] %v890_v22  ;;  %v891_v24 = vadd.f32 %v886_v23, %v393_v20 }
 0x17a   : > { %895 = vst [vmem:[#allocation2 + $0x8] sm:$0xff] %v891_v24 }
 0x17b   : > { %v1710_v25 = vld [vmem:[#allocation8 + $0x78] sm:$0xff]   ;;  %v1958_v27 = vmov 0.0   ;;  %v1712_v28 = vld [vmem:[#allocation8 + $0x70] sm:$0xff]   ;;  %v1714_v30 = vld [vmem:[#allocation8 + $0x68] sm:$0xff]   ;;  %v906_v31 = vlaneseq  ;;  %vm1959_vm0 = vmmov 0  }
 0x17c   : > { %v1711_v26 = vld [vmem:[#allocation8 + $0x38] sm:$0xff]   ;;  %1488 = vmatprep.subr.bf16.mxu1 %v1958_v27  ;;  %1457 = vmatprep.subr.bf16.mxu0 %v1710_v25  ;;  %v1713_v29 = vld [vmem:[#allocation8 + $0x30] sm:$0xff]   ;;  %v1715_v32 = vld [vmem:[#allocation8 + $0x28] sm:$0xff]  }
 0x17d   : > { %1458 = vmatpush3.bf16.msra.mxu0 %v1711_v26  ;;  %v1716_v33 = vld [vmem:[#allocation8 + $0x60] sm:$0xff]   ;;  %v907_v34 = vshrl.u32 %v906_v31, 7  ;;  %v1718_v36 = vld [vmem:[#allocation8 + $0x58] sm:$0xff]   ;;  %v1720_v40 = vld [vmem:[#allocation8 + $0x50] sm:$0xff]   ;;  %1504 = vmatprep.mubr.msk.bf16.mxu1 %vm1959_vm0, %v1958_v27 }
 0x17e   : > { %1459 = vmatprep.subr.bf16.mxu0 %v1712_v28  ;;  %v1717_v35 = vld [vmem:[#allocation8 + $0x20] sm:$0xff]   ;;  %v1719_v39 = vld [vmem:[#allocation8 + $0x18] sm:$0xff]   ;;  %v1721_v44 = vld [vmem:[#allocation8 + $0x10] sm:$0xff]  }
 0x17f   : > { %v908_v37 = vsub.s32 0, %v907_v34  ;;  %v912_v38 = vsub.s32 1, %v907_v34  ;;  %v901_v41 = vld [vmem:[#allocation2] sm:$0xff]  ;;  %v900_v47 = vld [vmem:[#allocation2 + $0x10] sm:$0xff]  ;;  %v902_v48 = vld [vmem:[#allocation2 + $0x18] sm:$0xff] }
 0x180   : > { %v904_v43 = vld [vmem:[%s2267_s2] sm:$0x3]  ;;  %v1722_v49 = vld [vmem:[#allocation8 + $0x48] sm:$0xff]   ;;  %v1726_v50 = vld [vmem:[#allocation9 + $0x38] sm:$0xff]  }
 0x181   : > { %1460 = vmatpush3.bf16.msra.mxu0 %v1713_v29  ;;  %v903_v42 = vld [vmem:[#allocation2 + $0x8] sm:$0xff]  ;;  %v909_v45 = vrot.slane %v904_v43, %v908_v37  ;;  %v913_v46 = vrot.slane %v904_v43, %v912_v38  ;;  %1489 = vmatpush3.bf16.msra.mxu1 %v1726_v50  ;;  %v1724_v56 = vld [vmem:[#allocation8 + $0x40] sm:$0xff]   ;;  %v1727_v0 = vld [vmem:[#allocation9 + $0x30] sm:$0xff]  }
 0x182   : > { %1461 = vmatprep.subr.bf16.mxu0 %v1714_v30  ;;  %1490 = vmatprep.subr.bf16.mxu1 %v1958_v27  ;;  %v1723_v55 = vld [vmem:[#allocation8 + $0x8] sm:$0xff]   ;;  %v1725_v57 = vld [vmem:[#allocation8] sm:$0xff]   ;;  %v1730_v3 = vld [vmem:[#allocation9 + $0x18] sm:$0xff]  }
 0x183   : > { %v917_v51 = vadd.f32 %v913_v46, %v901_v41  ;;  %v919_v52 = vadd.f32 %v913_v46, %v903_v42  ;;  %v916_v53 = vadd.f32 %v909_v45, %v900_v47  ;;  %v918_v54 = vadd.f32 %v909_v45, %v902_v48  ;;  %v1728_v1 = vld [vmem:[#allocation9 + $0x28] sm:$0xff]   ;;  %v1729_v2 = vld [vmem:[#allocation9 + $0x20] sm:$0xff]   ;;  %v1731_v4 = vld [vmem:[#allocation9 + $0x10] sm:$0xff]  }
 0x184   : > { %v1732_v5 = vld [vmem:[#allocation9 + $0x8] sm:$0xff]   ;;  %v1733_v6 = vld [vmem:[#allocation9] sm:$0xff]  }
 0x185   : > { %1462 = vmatpush3.bf16.msra.mxu0 %v1715_v32  ;;  %1734 = vtanh.f32 %v917_v51  ;;  %1491 = vmatpush3.bf16.msra.mxu1 %v1727_v0  ;;  %v1424_v9 = vld [vmem:[%s2269_s4] ss:$0 sm:$0xff] }
 0x186   : > { %1463 = vmatprep.subr.bf16.mxu0 %v1716_v33  ;;  %1736 = vtanh.f32 %v919_v52  ;;  %1492 = vmatprep.subr.bf16.mxu1 %v1958_v27  ;;  %v1441_v19 = vld [vmem:[%s2271_s6] ss:$0 sm:$0xff] }
 0x187   : > { %1738 = vtanh.f32 %v916_v53 }
 0x188   : > { %1740 = vtanh.f32 %v918_v54 }
 0x189   : > { %1464 = vmatpush3.bf16.msra.mxu0 %v1717_v35  ;;  %1493 = vmatpush3.bf16.msra.mxu1 %v1728_v1 }
 0x18a   : > { %1465 = vmatprep.subr.bf16.mxu0 %v1718_v36  ;;  %1494 = vmatprep.subr.bf16.mxu1 %v1958_v27 }
 0x18d   : > { %1466 = vmatpush3.bf16.msra.mxu0 %v1719_v39  ;;  %1495 = vmatpush3.bf16.msra.mxu1 %v1729_v2 }
 0x18e   : > { %1467 = vmatprep.subr.bf16.mxu0 %v1720_v40  ;;  %1496 = vmatprep.subr.bf16.mxu1 %v1958_v27 }
 0x191   : > { %1468 = vmatpush3.bf16.msra.mxu0 %v1721_v44  ;;  %1497 = vmatpush3.bf16.msra.mxu1 %v1730_v3 }
 0x192   : > { %1469 = vmatprep.subr.bf16.mxu0 %v1722_v49  ;;  %v1735_v58 = vpop.eup %1734  ;;  %1498 = vmatprep.subr.bf16.mxu1 %v1958_v27 }
 0x193   : > { %v1737_v59 = vpop.eup %1736 }
 0x194   : > { %v1739_v60 = vpop.eup %1738  ;;  %v925_v61 = vpack.c.bf16 %v1737_v59, %v1735_v58 }
 0x195   : > { %1470 = vmatpush3.bf16.msra.mxu0 %v1723_v55  ;;  %v1741_v62 = vpop.eup %1740  ;;  %1499 = vmatpush3.bf16.msra.mxu1 %v1731_v4 }
 0x196   : > { %1471 = vmatprep.subr.bf16.mxu0 %v1724_v56  ;;  %1093 = vmatprep.mubr.bf16.mxu0 %v925_v61  ;;  %v924_v63 = vpack.c.bf16 %v1741_v62, %v1739_v60 }
 0x197   : > { %1500 = vmatprep.subr.bf16.mxu1 %v1958_v27 }
 0x199   : > { %1472 = vmatpush3.bf16.msra.mxu0 %v1725_v57  ;;  %1501 = vmatpush3.bf16.msra.mxu1 %v1732_v5 }
 0x19a   : > { %1502 = vmatprep.subr.bf16.mxu1 %v1958_v27 }
 0x19c   : > { %1094 = vmatmul.mubr.bf16.vlgmr.msra.gmra.mxu0 %v924_v63 }
 0x19d   : > { %1503 = vmatpush3.bf16.msra.mxu1 %v1733_v6 }
 0x25c   : > { %v1473_v7 = vpop.f32.mrf.mxu0 }
 0x25e   : > { %v1474_v8 = vpop.f32.mrf.mxu0 }
 0x25f   : > { %v1475_v10 = vadd.f32 %v1474_v8, %v1473_v7 }
 0x260   : > { %v1476_v11 = vpop.f32.mrf.mxu0 }
 0x261   : > { %v1096_v12 = vadd.f32 %v1475_v10, %v1424_v9 }
 0x262   : > { %v1477_v13 = vpop.f32.mrf.mxu0 }
 0x263   : > { %v1478_v14 = vadd.f32 %v1477_v13, %v1476_v11  ;;  %1742 = vtanh.f32 %v1096_v12 }
 0x265   : > { %v1099_v15 = vadd.f32 %v1478_v14, %v1424_v9 }
 0x267   : > { %1744 = vtanh.f32 %v1099_v15 }
 0x270   : > { %v1743_v16 = vpop.eup %1742 }
 0x274   : > { %v1745_v17 = vpop.eup %1744 }
 0x275   : > { %v1104_v18 = vpack.c.bf16 %v1745_v17, %v1743_v16 }
 0x277   : > { %1505 = vmatmul.mubr.bf16.vlgmr.msra.gmra.mxu1 %v1104_v18 }
 0x337   : > { %v1210_v20 = vpop.f32.mrf.mxu1 }
 0x338   : > { %v1211_v21 = vadd.f32 %v1441_v19, %v1210_v20 }
 0x339   : > { %v1506_v22 = vpop.f32.mrf.mxu1 }
 0x33a   : > { %1217 = vst [vmem:[#allocation11] sm:$0xff] %v1211_v21 }
 0x33b   : > { %v1213_v23 = vpop.f32.mrf.mxu1 }
 0x33c   : > { %v1214_v24 = vadd.f32 %v1441_v19, %v1213_v23 }
 0x33d   : > { %v1507_v25 = vpop.f32.mrf.mxu1 }
 0x33e   : > { %1218 = vst [vmem:[#allocation11 + $0x8] sm:$0xff] %v1214_v24 }
 0x33f PF: > { %p1543_p5 = scmp.eq.s32.totalorder %s2032_s30, 1  ;;  %s1960_s22 = smov [#allocation11]  }
 0x340   : > { %s1228_s16 = sshll.u32 %s1960_s22, 4  ;;  %s1229_s16 = int_to_ptr.vmem [resolvable:$true] %s1228_s16 }
 0x341   : > { %s1854_s17 = scalar_lea.vmem %s1229_s16, 256  ;;  %p1861_p13 = scmp.lt.s32.totalorder %s1229_s16, %s1229_s16 }
 0x342   : > { %p1855_p2 = scmp.ne.s32.totalorder %s1229_s16, %s1854_s17  ;;  %p1862_p7 = scmp.lt.s32.totalorder %s1854_s17, %s1854_s17 }
 0x344   : > { %p1856_p3 = pnand %p1855_p2, %p1543_p5  ;;  %p1863_p9 = por %p1862_p7, %p1861_p13 }
 0x346   : > { %p1857_p6 = pneg %p1856_p3 }
 0x348   : > { %p1864_p11 = pnand %p1863_p9, %p1857_p6 }
 0x34a   : > { %1867 = shalt.err (!%p1864_p11)
}
 0x34b   : > { %s1961_s13 = smov 128   ;;  %s1962_s24 = smov 8  }
 0x34c   : > { %s2296_s3 = sld [smem:[#allocation23_spill]] }
 0x352   : > { %1521 = dma.vmem_to_hbm [thread:$0]  (%p1543_p5), %s1229_s16, 256, %s2296_s3, [#allocation5], %s1961_s13, %s1961_s13, %s1962_s24  }
 0x353   : > { %1919 = dma.done.wait (%p1543_p5), [#allocation5], 256  }
 0x354   : > { %1921 = vsyncadd (%p1543_p5), [#allocation5], 4294967040 }
 0x355 PF: > { %s25_s29 = sadd.s32 1, %s1944_s29   ;;  %s2297_s0 = sld [smem:[#allocation17_spill]] }
 0x356   : > { %p22_p8 = scmp.ge.s32.totalorder %s25_s29, 4   ;;  %s2298_s26 = sld [smem:[#allocation19_spill]] }
 0x357   : > { %s2299_s11 = sld [smem:[#allocation18_spill]]  ;;  %s2300_s24 = smov %s1928_s25 }
 0x358   : > { %s2302_s27 = smov %s1940_s28 }
 0x359   :  { %24 = sbr.rel (!%p22_p8) target bundleno = 13 (0xd), region = 115 }
 0x35b   : > { %s2301_s25 = smov %s2297_s0 }
 0x35d   : > { %s2303_s28 = smov %s2299_s11 }
 0x35e   :  { %1244 = vsyncpa [#allocation4], 1 }
 0x35f   :  { %1246 = vsyncpa [#allocation4 + $0x1], 1 }
 0x360   :  { %1247 = vsyncpa [#allocation7], 1 }
 0x361   :  { %1249 = vsyncpa [#allocation7 + $0x1], 1 }
 0x362   :  { %1250 = vsyncpa [#allocation10], 1 }
 0x363   :  { %1251 = vsyncpa [#allocation5], 1 }
 0x364   :  { %1253 = vsyncpa [#allocation5 + $0x1], 1 }

// kernel: tpu_custom_call.1
= control target key start
LH: loop header
LB: loop body
LE: loop exit
PB: predicated region body
PF: predicated region fallthrough
CT: control target
= control target key end

     0   :  { %s2265_s0 = inlined_call_operand.hbm [shape: bf16[16,1024], index: 0, kind: input, shape index: {}]   ;;  %s2266_s1 = inlined_call_operand.hbm [shape: bf16[1024,256], index: 1, kind: input, shape index: {}]   ;;  %s2267_s2 = inlined_call_operand.vmem [shape: f32[1,256], index: 2, kind: input, shape index: {}]   ;;  %s2268_s3 = inlined_call_operand.hbm [shape: bf16[256,128], index: 3, kind: input, shape index: {}]   ;;  %s2269_s4 = inlined_call_operand.vmem [shape: f32[1,128], index: 4, kind: input, shape index: {}]   ;;  %s2270_s5 = inlined_call_operand.hbm [shape: bf16[128,128], index: 5, kind: input, shape index: {}]   ;;  %s2271_s6 = inlined_call_operand.vmem [shape: f32[1,128], index: 6, kind: input, shape index: {}]   ;;  %s2272_s7 = inlined_call_operand.hbm [shape: f32[16,128], index: 7, kind: output, shape index: {}]  }
   0x1   :  { %2277 = sst [smem:[#allocation20_spill]] %s2265_s0 }
   0x2   :  { %2278 = sst [smem:[#allocation21_spill]] %s2268_s3 }
   0x3   :  { %2279 = sst [smem:[#allocation22_spill]] %s2270_s5 }
   0x4   :  { %2280 = sst [smem:[#allocation23_spill]] %s2272_s7 }
   0x5   :  { %12 = vsyncpa [#allocation4], 0 }
   0x6   :  { %14 = vsyncpa [#allocation4 + $0x1], 0 }
   0x7   :  { %15 = vsyncpa [#allocation7], 0 }
   0x8   :  { %17 = vsyncpa [#allocation7 + $0x1], 0 }
   0x9   :  { %18 = vsyncpa [#allocation10], 0 }
   0xa   :  { %19 = vsyncpa [#allocation5], 0  ;;  %s2003_s24 = smov 0   ;;  %s2005_s25 = smov 0  }
   0xb   :  { %s2007_s26 = smov 0   ;;  %s2009_s27 = smov 0  }
   0xc   :  { %s2011_s28 = smov 0   ;;  %s2013_s29 = smov 0  }
   0xd LB: > { %2281 = sst [smem:[#allocation17_spill]] %s1932_s26  ;;  %s2032_s30 = sadd.s32 4294967295, %s1944_s29   ;;  %s1944_s29 = sphi %s2013_s29, %s25_s29   ;;  %s1940_s28 = sphi %s2011_s28, %s2303_s28   ;;  %s1936_s27 = sphi %s2009_s27, %s2302_s27   ;;  %s1932_s26 = sphi %s2007_s26, %s2298_s26   ;;  %s1928_s25 = sphi %s2005_s25, %s2301_s25   ;;  %s1924_s24 = sphi %s2003_s24, %s2300_s24  }
   0xe   : > { %s46_s8 = sadd.s32 1, %s1932_s26  ;;  %p53_p0 = scmp.ne.s32.totalorder %s1932_s26, %s1928_s25 }
   0xf   : > { %p54_p1 = scmp.eq.s32.totalorder %s1944_s29, 0  ;;  %p59_p2 = scmp.ne.s32.totalorder %s1928_s25, %s1924_s24 }
  0x10   : > { %p2273_p3 = scmp.eq.s32.totalorder %s2032_s30, 0  ;;  %p1338_p5 = scmp.ge.s32.totalorder %s1944_s29, 1 }
  0x11   : > { %p55_p4 = por %p54_p1, %p53_p0  ;;  %p227_p7 = scmp.lt.s32.totalorder %s1944_s29, 3 }
  0x12   : > { %p2043_p6 = por %p2273_p3, %p59_p2  ;;  %s1946_s11 = smov [#allocation8]  }
  0x13   : > { %p2048_p8 = pnand %p1338_p5, %p227_p7  ;;  %s242_s12 = sshll.u32 %s1946_s11, 4  ;;  %s243_s12 = int_to_ptr.vmem [resolvable:$true] %s242_s12 }
  0x14   : > { %s2282_s9 = scalar_select %p2043_p6, 1, 0 }
  0x15   : > { %p1524_p9 = pneg %p2048_p8  ;;  %p1540_p10 = scmp.lt.s32.totalorder %s1944_s29, 2 }
  0x16   : > { %s1947_s15 = smov [#allocation9]   ;;  %s1757_s17 = scalar_lea.vmem %s243_s12, 2048 }
  0x17   : > { %p2057_p11 = pnand %p1524_p9, %p2273_p3  ;;  %p2061_p12 = pnand %p1540_p10, %p55_p4 }
  0x18   : > { %s258_s16 = sshll.u32 %s1947_s15, 4  ;;  %p1758_p0 = scmp.ne.s32.totalorder %s243_s12, %s1757_s17  ;;  %s259_s16 = int_to_ptr.vmem [resolvable:$true] %s258_s16 }
  0x19   : > { %p1748_p13 = pneg %p2057_p11  ;;  %p1765_p5 = scmp.lt.s32.totalorder %s243_s12, %s243_s12 }
  0x1a   : > { %p1766_p7 = scmp.lt.s32.totalorder %s1757_s17, %s1757_s17 }
  0x1b   : > { %p1760_p1 = pnand %p1758_p0, %p1748_p13 }
  0x1c   : > { %p1767_p9 = por %p1766_p7, %p1765_p5 }
  0x1d   : > { %p1761_p2 = pneg %p1760_p1 }
  0x1f   : > { %p1768_p3 = pnand %p1767_p9, %p1761_p2 }
  0x21   : > { %1771 = shalt.err (!%p1768_p3)
}
  0x22   : > { %s1948_s18 = smov 64   ;;  %s1949_s19 = smov 4  }
  0x23   : > { %s2286_s3 = sld [smem:[#allocation21_spill]]  ;;  %s1783_s22 = scalar_lea.vmem %s259_s16, 1024 }
  0x24   : > { %p1784_p4 = scmp.ne.s32.totalorder %s259_s16, %s1783_s22  ;;  %p1791_p1 = scmp.lt.s32.totalorder %s259_s16, %s259_s16 }
  0x25   : > { %p1792_p6 = scmp.lt.s32.totalorder %s1783_s22, %s1783_s22 }
  0x26   : > { %p1786_p10 = pnand %p1784_p4, %p1748_p13 }
  0x27   : > { %p1793_p5 = por %p1792_p6, %p1791_p1 }
  0x28   : > { %p1787_p0 = pneg %p1786_p10 }
  0x29   : > { %1527 = dma.hbm_to_vmem [thread:$0]  (!%p2057_p11), %s2286_s3, 2048, %s243_s12, [#allocation7], %s1948_s18, %s1948_s18, %s1949_s19  }
  0x2a   : > { %p1794_p2 = pnand %p1793_p5, %p1787_p0 }
  0x2c   : > { %1797 = shalt.err (!%p1794_p2)
}
  0x2d   : > { %s2287_s5 = sld [smem:[#allocation22_spill]]  ;;  %s2084_s11 = sand.u32 1, %s1932_s26  }
  0x2e   : > { %s34_s12 = sadd.s32 1, %s1940_s28  ;;  %s1342_s15 = sshll.u32 %s2084_s11, 5 }
  0x2f   : > { %p35_p3 = scmp.ge.s32.totalorder %s34_s12, 2  ;;  %s1454_s13 = sshll.u32 %s1940_s28, 8 }
  0x30   : > { %s2289_s0 = sld [smem:[#allocation20_spill]]  ;;  %s279_s22 = scalar_lea.vmem [#allocation3], %s1342_s15 }
  0x31   : > { %s2305_s12 = smov (%p35_p3, %s34_s12), 0  ;;  %s289_s23 = sshll.u32 %s279_s22, 4  ;;  %s290_s23 = int_to_ptr.vmem [resolvable:$true] %s289_s23 }
  0x32   : > { %2288 = sst [smem:[#allocation18_spill]] %s2305_s12  ;;  %s1811_s24 = scalar_lea.vmem %s290_s23, 512 }
  0x33   : > { %1530 = dma.hbm_to_vmem [thread:$0]  (!%p2057_p11), %s2287_s5, 1024, %s259_s16, [#allocation10], %s1948_s18, %s1948_s18, %s1949_s19  }
  0x34   : > { %s42_s16 = ssub.s32 %s1940_s28, %s2305_s12  ;;  %s276_s19 = scalar_lea.sflag [#allocation4], %s2084_s11 }
  0x35   : > { %p44_p6 = scmp.eq.s32.totalorder %s42_s16, 0  ;;  %p1800_p11 = pneg %p2061_p12 }
  0x36   : > { %s2094_s21 = scalar_lea.hbm %s2289_s0, %s1454_s13  ;;  %p1812_p13 = scmp.ne.s32.totalorder %s290_s23, %s1811_s24 }
  0x37   : > { %s2101_s18 = scalar_select %p44_p6, %s1932_s26, %s46_s8  }
  0x38   : > { %p1814_p7 = pnand %p1812_p13, %p1800_p11  ;;  %s1950_s17 = smov [#allocation3]  }
  0x39   : > { %2290 = sst [smem:[#allocation19_spill]] %s2101_s18  ;;  %s1816_s13 = sshll.u32 %s1950_s17, 4  ;;  %s1817_s13 = int_to_ptr.vmem [resolvable:$false] %s1816_s13 }
  0x3a   : > { %p1815_p9 = pneg %p1814_p7  ;;  %s1818_s15 = scalar_lea.vmem %s1817_s13, 1024 }
  0x3b   : > { %p1819_p4 = scmp.lt.s32.totalorder %s290_s23, %s1817_s13  ;;  %p1820_p10 = scmp.lt.s32.totalorder %s1818_s15, %s1811_s24 }
  0x3d   : > { %p1821_p0 = por %p1820_p10, %p1819_p4 }
  0x3f   : > { %p1822_p1 = pnand %p1821_p0, %p1815_p9 }
  0x41   : > { %1825 = shalt.err (!%p1822_p1)
}
  0x42   : > { %s1951_s8 = smov 512   ;;  %s1952_s20 = smov 256  }
  0x43   : > { %s1953_s22 = smov 16   ;;  %s299_s16 = sand.u32 1, %s1944_s29  }
  0x44   : > { %1534 = dma.hbm_to_vmem [thread:$0]  (!%p2061_p12), %s2094_s21, 512, %s290_s23, %s276_s19, %s1951_s8, %s1952_s20, %s1953_s22  }
  0x45   : > { %s1345_s17 = sshll.u32 %s2084_s11, 9  ;;  %s1456_s0 = sshll.u32 %s1940_s28, 13 }
  0x46   : > { %s303_s3 = scalar_lea.vmem [#allocation6], %s1345_s17  ;;  %s310_s5 = scalar_lea.hbm %s2266_s1, %s1456_s0 }
  0x47   : > { %s311_s13 = sshll.u32 %s303_s3, 4  ;;  %s300_s12 = scalar_lea.sflag [#allocation7], %s299_s16  ;;  %s312_s13 = int_to_ptr.vmem [resolvable:$true] %s311_s13 }
  0x48   : > { %s1839_s18 = scalar_lea.vmem %s312_s13, 8192  ;;  %s1954_s26 = smov [#allocation6]  }
  0x49   : > { %p1840_p5 = scmp.ne.s32.totalorder %s312_s13, %s1839_s18  ;;  %s1844_s7 = sshll.u32 %s1954_s26, 4  ;;  %s1845_s7 = int_to_ptr.vmem [resolvable:$false] %s1844_s7 }
  0x4a   : > { %s1846_s21 = scalar_lea.vmem %s1845_s7, 16384  ;;  %p1847_p6 = scmp.lt.s32.totalorder %s312_s13, %s1845_s7 }
  0x4b   : > { %p1842_p2 = pnand %p1840_p5, %p1800_p11  ;;  %p1848_p13 = scmp.lt.s32.totalorder %s1846_s21, %s1839_s18 }
  0x4d   : > { %p1843_p3 = pneg %p1842_p2  ;;  %p1849_p7 = por %p1848_p13, %p1847_p6 }
  0x4f   : > { %p1850_p9 = pnand %p1849_p7, %p1843_p3 }
  0x51   : > { %1853 = shalt.err (!%p1850_p9)
}
  0x52   : > { %s1955_s3 = smov 128   ;;  %s1956_s0 = smov 8  }
  0x53   : > { %1537 = dma.hbm_to_vmem [thread:$0]  (!%p2061_p12), %s310_s5, 8192, %s312_s13, %s300_s12, %s1955_s3, %s1955_s3, %s1956_s0  }
  0x54   : > { %323 = sbr.rel (%p2048_p8) target bundleno = 853 (0x355), region = 48  ;;  %s325_s11 = sand.u32 (!%p2048_p8), 1, %s1928_s25  }
  0x55   : > { %s1350_s23 = sshll.u32 (!%p2048_p8), %s325_s11, 5  ;;  %s326_s26 = scalar_lea.sflag (!%p2048_p8), [#allocation4], %s325_s11 }
  0x56   : > { %s2126_s19 = scalar_lea.vmem (!%p2048_p8), [#allocation3], %s1350_s23  ;;  %p2291_p11 = scmp.ne.s32.totalorder (!%p2048_p8), %s2282_s9, 0 }
  0x59   : > { %1903 = dma.done.wait (%p2291_p11), %s326_s26, 512  }
  0x5a   : > { %1905 = vsyncadd (%p2291_p11), %s326_s26, 4294966784  ;;  %s334_s7 = sand.u32 1, %s2032_s30   ;;  %s1351_s14 = sshll.u32 %s325_s11, 9 }
  0x5b   : > { %s335_s5 = scalar_lea.sflag [#allocation7], %s334_s7  ;;  %s2133_s12 = scalar_lea.vmem [#allocation6], %s1351_s14 }
  0x5c   : > { %1907 = dma.done.wait (%p2291_p11), %s335_s5, 8192  }
  0x5d   : > { %1909 = vsyncadd (%p2291_p11), %s335_s5, 4294959104  ;;  %p2292_p8 = scmp.eq.s32.totalorder %s2032_s30, 0 }
  0x5f   : > { %1911 = dma.done.wait (%p2292_p8), [#allocation7], 2048   ;;  %p2293_p12 = pmov %p2292_p8 }
  0x60   : > { %p2294_p4 = pmov %p2292_p8 }
  0x61   : > { %1913 = vsyncadd (%p2293_p12), [#allocation7], 4294965248 }
  0x62   : > { %1915 = dma.done.wait (%p2294_p4), [#allocation10], 1024   ;;  %p2295_p10 = pmov %p2294_p4 }
  0x63   : > { %p1354_p0 = scmp.ne.s32.totalorder %s1936_s27, 0 }
  0x64   : > { %1917 = vsyncadd (%p2295_p10), [#allocation10], 4294966272 }
  0x65   : > { %385 = sbr.rel (%p1354_p0) target bundleno = 109 (0x6d), region = 68 }
  0x6a   : > { %v1957_v0 = vmov 0.0  }
  0x6b   : > { %386 = vst [vmem:[#allocation2 + $0x10] sm:$0xff] %v1957_v0  ;;  %387 = vst [vmem:[#allocation2] sm:$0xff] %v1957_v0 }
  0x6c   : > { %388 = vst [vmem:[#allocation2 + $0x18] sm:$0xff] %v1957_v0  ;;  %389 = vst [vmem:[#allocation2 + $0x8] sm:$0xff] %v1957_v0 }
  0x6d PF: > { %v1608_v1 = vld [vmem:[%s2133_s12 + $0x74] ss:$8 sps:$4 sm:$0xff]   ;;  %v1612_v3 = vld [vmem:[%s2133_s12 + $0x70] ss:$8 sps:$4 sm:$0xff]   ;;  %v1614_v5 = vld [vmem:[%s2133_s12 + $0x64] ss:$8 sps:$4 sm:$0xff]  }
  0x6e   : > { %v1610_v2 = vld [vmem:[%s2133_s12 + $0x174] ss:$8 sps:$4 sm:$0xff]   ;;  %802 = vmatprep.subr.bf16.mxu0 %v1608_v1  ;;  %v1613_v4 = vld [vmem:[%s2133_s12 + $0x170] ss:$8 sps:$4 sm:$0xff]   ;;  %v1616_v6 = vld [vmem:[%s2133_s12 + $0x164] ss:$8 sps:$4 sm:$0xff]  }
  0x6f   : > { %845 = vmatprep.subr.bf16.mxu1 %v1610_v2  ;;  %803 = vmatpush1.bf16.msra.mxu0 %v1612_v3  ;;  %v1618_v7 = vld [vmem:[%s2133_s12 + $0x60] ss:$8 sps:$4 sm:$0xff]   ;;  %v1620_v9 = vld [vmem:[%s2133_s12 + $0x54] ss:$8 sps:$4 sm:$0xff]   ;;  %v1624_v11 = vld [vmem:[%s2133_s12 + $0x50] ss:$8 sps:$4 sm:$0xff]  }
  0x70   : > { %846 = vmatpush1.bf16.msra.mxu1 %v1613_v4  ;;  %804 = vmatprep.subr.bf16.mxu0 %v1614_v5  ;;  %v1619_v8 = vld [vmem:[%s2133_s12 + $0x160] ss:$8 sps:$4 sm:$0xff]   ;;  %v1622_v10 = vld [vmem:[%s2133_s12 + $0x154] ss:$8 sps:$4 sm:$0xff]   ;;  %v1625_v12 = vld [vmem:[%s2133_s12 + $0x150] ss:$8 sps:$4 sm:$0xff]  }
  0x71   : > { %847 = vmatprep.subr.bf16.mxu1 %v1616_v6  ;;  %v1626_v13 = vld [vmem:[%s2133_s12 + $0x44] ss:$8 sps:$4 sm:$0xff]   ;;  %v1630_v15 = vld [vmem:[%s2133_s12 + $0x40] ss:$8 sps:$4 sm:$0xff]   ;;  %v1632_v17 = vld [vmem:[%s2133_s12 + $0x34] ss:$8 sps:$4 sm:$0xff]  }
  0x72   : > { %v1628_v14 = vld [vmem:[%s2133_s12 + $0x144] ss:$8 sps:$4 sm:$0xff]   ;;  %v1631_v16 = vld [vmem:[%s2133_s12 + $0x140] ss:$8 sps:$4 sm:$0xff]   ;;  %v1634_v18 = vld [vmem:[%s2133_s12 + $0x134] ss:$8 sps:$4 sm:$0xff]  }
  0x73   : > { %805 = vmatpush1.bf16.msra.mxu0 %v1618_v7  ;;  %v1636_v19 = vld [vmem:[%s2133_s12 + $0x30] ss:$8 sps:$4 sm:$0xff]   ;;  %v1638_v21 = vld [vmem:[%s2133_s12 + $0x24] ss:$8 sps:$4 sm:$0xff]   ;;  %v1642_v23 = vld [vmem:[%s2133_s12 + $0x20] ss:$8 sps:$4 sm:$0xff]  }
  0x74   : > { %848 = vmatpush1.bf16.msra.mxu1 %v1619_v8  ;;  %806 = vmatprep.subr.bf16.mxu0 %v1620_v9  ;;  %v1637_v20 = vld [vmem:[%s2133_s12 + $0x130] ss:$8 sps:$4 sm:$0xff]   ;;  %v1640_v22 = vld [vmem:[%s2133_s12 + $0x124] ss:$8 sps:$4 sm:$0xff]   ;;  %v1643_v24 = vld [vmem:[%s2133_s12 + $0x120] ss:$8 sps:$4 sm:$0xff]  }
  0x75   : > { %849 = vmatprep.subr.bf16.mxu1 %v1622_v10  ;;  %v1644_v25 = vld [vmem:[%s2133_s12 + $0x14] ss:$8 sps:$4 sm:$0xff]   ;;  %v1648_v27 = vld [vmem:[%s2133_s12 + $0x10] ss:$8 sps:$4 sm:$0xff]   ;;  %v1650_v29 = vld [vmem:[%s2133_s12 + $0x4] ss:$8 sps:$4 sm:$0xff]  }
  0x76   : > { %v1646_v26 = vld [vmem:[%s2133_s12 + $0x114] ss:$8 sps:$4 sm:$0xff]   ;;  %v1649_v28 = vld [vmem:[%s2133_s12 + $0x110] ss:$8 sps:$4 sm:$0xff]   ;;  %v1652_v30 = vld [vmem:[%s2133_s12 + $0x104] ss:$8 sps:$4 sm:$0xff]  }
  0x77   : > { %807 = vmatpush1.bf16.msra.mxu0 %v1624_v11  ;;  %v1654_v31 = vld [vmem:[%s2133_s12] ss:$8 sps:$4 sm:$0xff]   ;;  %v1656_v33 = vld [vmem:[%s2133_s12 + $0xf4] ss:$8 sps:$4 sm:$0xff]   ;;  %v1660_v35 = vld [vmem:[%s2133_s12 + $0xf0] ss:$8 sps:$4 sm:$0xff]  }
  0x78   : > { %850 = vmatpush1.bf16.msra.mxu1 %v1625_v12  ;;  %808 = vmatprep.subr.bf16.mxu0 %v1626_v13  ;;  %v1655_v32 = vld [vmem:[%s2133_s12 + $0x100] ss:$8 sps:$4 sm:$0xff]   ;;  %v1658_v34 = vld [vmem:[%s2133_s12 + $0x1f4] ss:$8 sps:$4 sm:$0xff]   ;;  %v1661_v36 = vld [vmem:[%s2133_s12 + $0x1f0] ss:$8 sps:$4 sm:$0xff]  }
  0x79   : > { %851 = vmatprep.subr.bf16.mxu1 %v1628_v14  ;;  %v1662_v37 = vld [vmem:[%s2133_s12 + $0xe4] ss:$8 sps:$4 sm:$0xff]   ;;  %v1666_v39 = vld [vmem:[%s2133_s12 + $0xe0] ss:$8 sps:$4 sm:$0xff]   ;;  %v1668_v41 = vld [vmem:[%s2133_s12 + $0xd4] ss:$8 sps:$4 sm:$0xff]  }
  0x7a   : > { %v1664_v38 = vld [vmem:[%s2133_s12 + $0x1e4] ss:$8 sps:$4 sm:$0xff]   ;;  %v1667_v40 = vld [vmem:[%s2133_s12 + $0x1e0] ss:$8 sps:$4 sm:$0xff]   ;;  %v1670_v42 = vld [vmem:[%s2133_s12 + $0x1d4] ss:$8 sps:$4 sm:$0xff]  }
  0x7b   : > { %809 = vmatpush1.bf16.msra.mxu0 %v1630_v15  ;;  %v1672_v43 = vld [vmem:[%s2133_s12 + $0xd0] ss:$8 sps:$4 sm:$0xff]   ;;  %v1674_v45 = vld [vmem:[%s2133_s12 + $0xc4] ss:$8 sps:$4 sm:$0xff]   ;;  %v1678_v47 = vld [vmem:[%s2133_s12 + $0xc0] ss:$8 sps:$4 sm:$0xff]  }
  0x7c   : > { %852 = vmatpush1.bf16.msra.mxu1 %v1631_v16  ;;  %810 = vmatprep.subr.bf16.mxu0 %v1632_v17  ;;  %v1673_v44 = vld [vmem:[%s2133_s12 + $0x1d0] ss:$8 sps:$4 sm:$0xff]   ;;  %v1676_v46 = vld [vmem:[%s2133_s12 + $0x1c4] ss:$8 sps:$4 sm:$0xff]   ;;  %v1679_v49 = vld [vmem:[%s2133_s12 + $0x1c0] ss:$8 sps:$4 sm:$0xff]  }
  0x7d   : > { %853 = vmatprep.subr.bf16.mxu1 %v1634_v18  ;;  %v1706_v48 = vld [vmem:[%s2126_s19 + $0x4] ss:$16 sps:$4 sm:$0xff]   ;;  %v1709_v52 = vld [vmem:[%s2126_s19 + $0xc] ss:$16 sps:$4 sm:$0xff]   ;;  %v1684_v53 = vld [vmem:[%s2133_s12 + $0xb0] ss:$8 sps:$4 sm:$0xff]  }
  0x7e   : > { %v1680_v50 = vld [vmem:[%s2133_s12 + $0xb4] ss:$8 sps:$4 sm:$0xff]   ;;  %834 = vmatprep.mubr.bf16.mxu0 %v1706_v48  ;;  %877 = vmatprep.mubr.bf16.mxu1 %v1709_v52  ;;  %v1685_v54 = vld [vmem:[%s2133_s12 + $0x1b0] ss:$8 sps:$4 sm:$0xff]   ;;  %v1686_v55 = vld [vmem:[%s2133_s12 + $0xa4] ss:$8 sps:$4 sm:$0xff]  }
  0x7f   : > { %811 = vmatpush1.bf16.msra.mxu0 %v1636_v19  ;;  %v1682_v51 = vld [vmem:[%s2133_s12 + $0x1b4] ss:$8 sps:$4 sm:$0xff]   ;;  %v1688_v56 = vld [vmem:[%s2133_s12 + $0x1a4] ss:$8 sps:$4 sm:$0xff]   ;;  %v1690_v57 = vld [vmem:[%s2133_s12 + $0xa0] ss:$8 sps:$4 sm:$0xff]  }
  0x80   : > { %854 = vmatpush1.bf16.msra.mxu1 %v1637_v20  ;;  %812 = vmatprep.subr.bf16.mxu0 %v1638_v21  ;;  %v1691_v58 = vld [vmem:[%s2133_s12 + $0x1a0] ss:$8 sps:$4 sm:$0xff]   ;;  %v1692_v59 = vld [vmem:[%s2133_s12 + $0x94] ss:$8 sps:$4 sm:$0xff]   ;;  %v1696_v61 = vld [vmem:[%s2133_s12 + $0x90] ss:$8 sps:$4 sm:$0xff]  }
  0x81   : > { %855 = vmatprep.subr.bf16.mxu1 %v1640_v22  ;;  %v1694_v60 = vld [vmem:[%s2133_s12 + $0x194] ss:$8 sps:$4 sm:$0xff]   ;;  %v1697_v62 = vld [vmem:[%s2133_s12 + $0x190] ss:$8 sps:$4 sm:$0xff]   ;;  %v1698_v63 = vld [vmem:[%s2133_s12 + $0x84] ss:$8 sps:$4 sm:$0xff]  }
  0x82   : > { %v1700_v0 = vld [vmem:[%s2133_s12 + $0x184] ss:$8 sps:$4 sm:$0xff]   ;;  %v1702_v1 = vld [vmem:[%s2133_s12 + $0x80] ss:$8 sps:$4 sm:$0xff]   ;;  %v390_v6 = vld [vmem:[#allocation2 + $0x10] sm:$0xff]  ;;  %p1423_p1 = scmp.ne.s32.totalorder %s1936_s27, 1 }
  0x83   : > { %813 = vmatpush1.bf16.msra.mxu0 %v1642_v23  ;;  %v1703_v2 = vld [vmem:[%s2133_s12 + $0x180] ss:$8 sps:$4 sm:$0xff]   ;;  %v392_v15 = vld [vmem:[#allocation2 + $0x18] sm:$0xff] }
  0x84   : > { %856 = vmatpush1.bf16.msra.mxu1 %v1643_v24  ;;  %814 = vmatprep.subr.bf16.mxu0 %v1644_v25  ;;  %v1704_v3 = vld [vmem:[%s2126_s19] ss:$16 sps:$4 sm:$0xff]   ;;  %v1707_v4 = vld [vmem:[%s2126_s19 + $0x8] ss:$16 sps:$4 sm:$0xff]  }
  0x85   : > { %857 = vmatprep.subr.bf16.mxu1 %v1646_v26  ;;  %v391_v10 = vld [vmem:[#allocation2] sm:$0xff]  ;;  %v393_v20 = vld [vmem:[#allocation2 + $0x8] sm:$0xff] }
  0x87   : > { %815 = vmatpush1.bf16.msra.mxu0 %v1648_v27 }
  0x88   : > { %858 = vmatpush1.bf16.msra.mxu1 %v1649_v28  ;;  %816 = vmatprep.subr.bf16.mxu0 %v1650_v29 }
  0x89   : > { %859 = vmatprep.subr.bf16.mxu1 %v1652_v30 }
  0x8b   : > { %817 = vmatpush1.bf16.msra.mxu0 %v1654_v31 }
  0x8c   : > { %860 = vmatpush1.bf16.msra.mxu1 %v1655_v32  ;;  %818 = vmatprep.subr.bf16.mxu0 %v1656_v33 }
  0x8d   : > { %861 = vmatprep.subr.bf16.mxu1 %v1658_v34 }
  0x8f   : > { %819 = vmatpush2.bf16.msra.mxu0 %v1660_v35 }
  0x90   : > { %862 = vmatpush2.bf16.msra.mxu1 %v1661_v36  ;;  %820 = vmatprep.subr.bf16.mxu0 %v1662_v37 }
  0x91   : > { %863 = vmatprep.subr.bf16.mxu1 %v1664_v38 }
  0x93   : > { %821 = vmatpush2.bf16.msra.mxu0 %v1666_v39 }
  0x94   : > { %864 = vmatpush2.bf16.msra.mxu1 %v1667_v40  ;;  %822 = vmatprep.subr.bf16.mxu0 %v1668_v41 }
  0x95   : > { %865 = vmatprep.subr.bf16.mxu1 %v1670_v42 }
  0x97   : > { %823 = vmatpush2.bf16.msra.mxu0 %v1672_v43 }
  0x98   : > { %866 = vmatpush2.bf16.msra.mxu1 %v1673_v44  ;;  %824 = vmatprep.subr.bf16.mxu0 %v1674_v45 }
  0x99   : > { %867 = vmatprep.subr.bf16.mxu1 %v1676_v46 }
  0x9b   : > { %825 = vmatpush2.bf16.msra.mxu0 %v1678_v47 }
  0x9c   : > { %868 = vmatpush2.bf16.msra.mxu1 %v1679_v49  ;;  %826 = vmatprep.subr.bf16.mxu0 %v1680_v50 }
  0x9d   : > { %869 = vmatprep.subr.bf16.mxu1 %v1682_v51 }
  0x9f   : > { %827 = vmatpush2.bf16.msra.mxu0 %v1684_v53 }
  0xa0   : > { %870 = vmatpush2.bf16.msra.mxu1 %v1685_v54  ;;  %828 = vmatprep.subr.bf16.mxu0 %v1686_v55 }
  0xa1   : > { %871 = vmatprep.subr.bf16.mxu1 %v1688_v56 }
  0xa3   : > { %829 = vmatpush2.bf16.msra.mxu0 %v1690_v57 }
  0xa4   : > { %872 = vmatpush2.bf16.msra.mxu1 %v1691_v58  ;;  %830 = vmatprep.subr.bf16.mxu0 %v1692_v59 }
  0xa5   : > { %873 = vmatprep.subr.bf16.mxu1 %v1694_v60 }
  0xa7   : > { %831 = vmatpush2.bf16.msra.mxu0 %v1696_v61 }
  0xa8   : > { %874 = vmatpush2.bf16.msra.mxu1 %v1697_v62  ;;  %832 = vmatprep.subr.bf16.mxu0 %v1698_v63 }
  0xa9   : > { %875 = vmatprep.subr.bf16.mxu1 %v1700_v0 }
  0xab   : > { %833 = vmatpush2.bf16.msra.mxu0 %v1702_v1 }
  0xac   : > { %876 = vmatpush2.bf16.msra.mxu1 %v1703_v2 }
  0xae   : > { %835 = vmatmul.mubr.bf16.vlgmr.msra.gmra.mxu0 %v1704_v3 }
  0xaf   : > { %878 = vmatmul.mubr.bf16.vlgmr.msra.gmra.mxu1 %v1707_v4 }
 0x16e   : > { %v836_v5 = vpop.f32.mrf.mxu0 }
 0x16f   : > { %v879_v7 = vpop.f32.mrf.mxu1 }
 0x170   : > { %v880_v8 = vadd.f32 %v879_v7, %v836_v5  ;;  %v838_v9 = vpop.f32.mrf.mxu0 }
 0x171   : > { %v881_v11 = vpop.f32.mrf.mxu1 }
 0x172   : > { %v888_v12 = vadd.f32 %v880_v8, %v390_v6  ;;  %v882_v13 = vadd.f32 %v881_v11, %v838_v9  ;;  %v840_v14 = vpop.f32.mrf.mxu0 }
 0x173   : > { %v883_v16 = vpop.f32.mrf.mxu1 }
 0x174   : > { %892 = vst [vmem:[#allocation2 + $0x10] sm:$0xff] %v888_v12  ;;  %v889_v17 = vadd.f32 %v882_v13, %v391_v10  ;;  %v884_v18 = vadd.f32 %v883_v16, %v840_v14  ;;  %v842_v19 = vpop.f32.mrf.mxu0 }
 0x175   : > { %v885_v21 = vpop.f32.mrf.mxu1 }
 0x176   : > { %893 = vst [vmem:[#allocation2] sm:$0xff] %v889_v17  ;;  %v890_v22 = vadd.f32 %v884_v18, %v392_v15  ;;  %v886_v23 = vadd.f32 %v885_v21, %v842_v19  ;;  %899 = sbr.rel (%p1423_p1) target bundleno = 831 (0x33f), region = 72 }
 0x178   : > { %894 = vst [vmem:[#allocation2 + $0x18] sm:$0xff] %v890_v22  ;;  %v891_v24 = vadd.f32 %v886_v23, %v393_v20 }
 0x17a   : > { %895 = vst [vmem:[#allocation2 + $0x8] sm:$0xff] %v891_v24 }
 0x17b   : > { %v1710_v25 = vld [vmem:[#allocation8 + $0x78] sm:$0xff]   ;;  %v1958_v27 = vmov 0.0   ;;  %v1712_v28 = vld [vmem:[#allocation8 + $0x70] sm:$0xff]   ;;  %v1714_v30 = vld [vmem:[#allocation8 + $0x68] sm:$0xff]   ;;  %v906_v31 = vlaneseq  ;;  %vm1959_vm0 = vmmov 0  }
 0x17c   : > { %v1711_v26 = vld [vmem:[#allocation8 + $0x38] sm:$0xff]   ;;  %1488 = vmatprep.subr.bf16.mxu1 %v1958_v27  ;;  %1457 = vmatprep.subr.bf16.mxu0 %v1710_v25  ;;  %v1713_v29 = vld [vmem:[#allocation8 + $0x30] sm:$0xff]   ;;  %v1715_v32 = vld [vmem:[#allocation8 + $0x28] sm:$0xff]  }
 0x17d   : > { %1458 = vmatpush3.bf16.msra.mxu0 %v1711_v26  ;;  %v1716_v33 = vld [vmem:[#allocation8 + $0x60] sm:$0xff]   ;;  %v907_v34 = vshrl.u32 %v906_v31, 7  ;;  %v1718_v36 = vld [vmem:[#allocation8 + $0x58] sm:$0xff]   ;;  %v1720_v40 = vld [vmem:[#allocation8 + $0x50] sm:$0xff]   ;;  %1504 = vmatprep.mubr.msk.bf16.mxu1 %vm1959_vm0, %v1958_v27 }
 0x17e   : > { %1459 = vmatprep.subr.bf16.mxu0 %v1712_v28  ;;  %v1717_v35 = vld [vmem:[#allocation8 + $0x20] sm:$0xff]   ;;  %v1719_v39 = vld [vmem:[#allocation8 + $0x18] sm:$0xff]   ;;  %v1721_v44 = vld [vmem:[#allocation8 + $0x10] sm:$0xff]  }
 0x17f   : > { %v908_v37 = vsub.s32 0, %v907_v34  ;;  %v912_v38 = vsub.s32 1, %v907_v34  ;;  %v901_v41 = vld [vmem:[#allocation2] sm:$0xff]  ;;  %v900_v47 = vld [vmem:[#allocation2 + $0x10] sm:$0xff]  ;;  %v902_v48 = vld [vmem:[#allocation2 + $0x18] sm:$0xff] }
 0x180   : > { %v904_v43 = vld [vmem:[%s2267_s2] sm:$0x3]  ;;  %v1722_v49 = vld [vmem:[#allocation8 + $0x48] sm:$0xff]   ;;  %v1726_v50 = vld [vmem:[#allocation9 + $0x38] sm:$0xff]  }
 0x181   : > { %1460 = vmatpush3.bf16.msra.mxu0 %v1713_v29  ;;  %v903_v42 = vld [vmem:[#allocation2 + $0x8] sm:$0xff]  ;;  %v909_v45 = vrot.slane %v904_v43, %v908_v37  ;;  %v913_v46 = vrot.slane %v904_v43, %v912_v38  ;;  %1489 = vmatpush3.bf16.msra.mxu1 %v1726_v50  ;;  %v1724_v56 = vld [vmem:[#allocation8 + $0x40] sm:$0xff]   ;;  %v1727_v0 = vld [vmem:[#allocation9 + $0x30] sm:$0xff]  }
 0x182   : > { %1461 = vmatprep.subr.bf16.mxu0 %v1714_v30  ;;  %1490 = vmatprep.subr.bf16.mxu1 %v1958_v27  ;;  %v1723_v55 = vld [vmem:[#allocation8 + $0x8] sm:$0xff]   ;;  %v1725_v57 = vld [vmem:[#allocation8] sm:$0xff]   ;;  %v1730_v3 = vld [vmem:[#allocation9 + $0x18] sm:$0xff]  }
 0x183   : > { %v917_v51 = vadd.f32 %v913_v46, %v901_v41  ;;  %v919_v52 = vadd.f32 %v913_v46, %v903_v42  ;;  %v916_v53 = vadd.f32 %v909_v45, %v900_v47  ;;  %v918_v54 = vadd.f32 %v909_v45, %v902_v48  ;;  %v1728_v1 = vld [vmem:[#allocation9 + $0x28] sm:$0xff]   ;;  %v1729_v2 = vld [vmem:[#allocation9 + $0x20] sm:$0xff]   ;;  %v1731_v4 = vld [vmem:[#allocation9 + $0x10] sm:$0xff]  }
 0x184   : > { %v1732_v5 = vld [vmem:[#allocation9 + $0x8] sm:$0xff]   ;;  %v1733_v6 = vld [vmem:[#allocation9] sm:$0xff]  }
 0x185   : > { %1462 = vmatpush3.bf16.msra.mxu0 %v1715_v32  ;;  %1734 = vtanh.f32 %v917_v51  ;;  %1491 = vmatpush3.bf16.msra.mxu1 %v1727_v0  ;;  %v1424_v9 = vld [vmem:[%s2269_s4] ss:$0 sm:$0xff] }
 0x186   : > { %1463 = vmatprep.subr.bf16.mxu0 %v1716_v33  ;;  %1736 = vtanh.f32 %v919_v52  ;;  %1492 = vmatprep.subr.bf16.mxu1 %v1958_v27  ;;  %v1441_v19 = vld [vmem:[%s2271_s6] ss:$0 sm:$0xff] }
 0x187   : > { %1738 = vtanh.f32 %v916_v53 }
 0x188   : > { %1740 = vtanh.f32 %v918_v54 }
 0x189   : > { %1464 = vmatpush3.bf16.msra.mxu0 %v1717_v35  ;;  %1493 = vmatpush3.bf16.msra.mxu1 %v1728_v1 }
 0x18a   : > { %1465 = vmatprep.subr.bf16.mxu0 %v1718_v36  ;;  %1494 = vmatprep.subr.bf16.mxu1 %v1958_v27 }
 0x18d   : > { %1466 = vmatpush3.bf16.msra.mxu0 %v1719_v39  ;;  %1495 = vmatpush3.bf16.msra.mxu1 %v1729_v2 }
 0x18e   : > { %1467 = vmatprep.subr.bf16.mxu0 %v1720_v40  ;;  %1496 = vmatprep.subr.bf16.mxu1 %v1958_v27 }
 0x191   : > { %1468 = vmatpush3.bf16.msra.mxu0 %v1721_v44  ;;  %1497 = vmatpush3.bf16.msra.mxu1 %v1730_v3 }
 0x192   : > { %1469 = vmatprep.subr.bf16.mxu0 %v1722_v49  ;;  %v1735_v58 = vpop.eup %1734  ;;  %1498 = vmatprep.subr.bf16.mxu1 %v1958_v27 }
 0x193   : > { %v1737_v59 = vpop.eup %1736 }
 0x194   : > { %v1739_v60 = vpop.eup %1738  ;;  %v925_v61 = vpack.c.bf16 %v1737_v59, %v1735_v58 }
 0x195   : > { %1470 = vmatpush3.bf16.msra.mxu0 %v1723_v55  ;;  %v1741_v62 = vpop.eup %1740  ;;  %1499 = vmatpush3.bf16.msra.mxu1 %v1731_v4 }
 0x196   : > { %1471 = vmatprep.subr.bf16.mxu0 %v1724_v56  ;;  %1093 = vmatprep.mubr.bf16.mxu0 %v925_v61  ;;  %v924_v63 = vpack.c.bf16 %v1741_v62, %v1739_v60 }
 0x197   : > { %1500 = vmatprep.subr.bf16.mxu1 %v1958_v27 }
 0x199   : > { %1472 = vmatpush3.bf16.msra.mxu0 %v1725_v57  ;;  %1501 = vmatpush3.bf16.msra.mxu1 %v1732_v5 }
 0x19a   : > { %1502 = vmatprep.subr.bf16.mxu1 %v1958_v27 }
 0x19c   : > { %1094 = vmatmul.mubr.bf16.vlgmr.msra.gmra.mxu0 %v924_v63 }
 0x19d   : > { %1503 = vmatpush3.bf16.msra.mxu1 %v1733_v6 }
 0x25c   : > { %v1473_v7 = vpop.f32.mrf.mxu0 }
 0x25e   : > { %v1474_v8 = vpop.f32.mrf.mxu0 }
 0x25f   : > { %v1475_v10 = vadd.f32 %v1474_v8, %v1473_v7 }
 0x260   : > { %v1476_v11 = vpop.f32.mrf.mxu0 }
 0x261   : > { %v1096_v12 = vadd.f32 %v1475_v10, %v1424_v9 }
 0x262   : > { %v1477_v13 = vpop.f32.mrf.mxu0 }
 0x263   : > { %v1478_v14 = vadd.f32 %v1477_v13, %v1476_v11  ;;  %1742 = vtanh.f32 %v1096_v12 }
 0x265   : > { %v1099_v15 = vadd.f32 %v1478_v14, %v1424_v9 }
 0x267   : > { %1744 = vtanh.f32 %v1099_v15 }
 0x270   : > { %v1743_v16 = vpop.eup %1742 }
 0x274   : > { %v1745_v17 = vpop.eup %1744 }
 0x275   : > { %v1104_v18 = vpack.c.bf16 %v1745_v17, %v1743_v16 }
 0x277   : > { %1505 = vmatmul.mubr.bf16.vlgmr.msra.gmra.mxu1 %v1104_v18 }
 0x337   : > { %v1210_v20 = vpop.f32.mrf.mxu1 }
 0x338   : > { %v1211_v21 = vadd.f32 %v1441_v19, %v1210_v20 }
 0x339   : > { %v1506_v22 = vpop.f32.mrf.mxu1 }
 0x33a   : > { %1217 = vst [vmem:[#allocation11] sm:$0xff] %v1211_v21 }
 0x33b   : > { %v1213_v23 = vpop.f32.mrf.mxu1 }
 0x33c   : > { %v1214_v24 = vadd.f32 %v1441_v19, %v1213_v23 }
 0x33d   : > { %v1507_v25 = vpop.f32.mrf.mxu1 }
 0x33e   : > { %1218 = vst [vmem:[#allocation11 + $0x8] sm:$0xff] %v1214_v24 }
 0x33f PF: > { %p1543_p5 = scmp.eq.s32.totalorder %s2032_s30, 1  ;;  %s1960_s22 = smov [#allocation11]  }
 0x340   : > { %s1228_s16 = sshll.u32 %s1960_s22, 4  ;;  %s1229_s16 = int_to_ptr.vmem [resolvable:$true] %s1228_s16 }
 0x341   : > { %s1854_s17 = scalar_lea.vmem %s1229_s16, 256  ;;  %p1861_p13 = scmp.lt.s32.totalorder %s1229_s16, %s1229_s16 }
 0x342   : > { %p1855_p2 = scmp.ne.s32.totalorder %s1229_s16, %s1854_s17  ;;  %p1862_p7 = scmp.lt.s32.totalorder %s1854_s17, %s1854_s17 }
 0x344   : > { %p1856_p3 = pnand %p1855_p2, %p1543_p5  ;;  %p1863_p9 = por %p1862_p7, %p1861_p13 }
 0x346   : > { %p1857_p6 = pneg %p1856_p3 }
 0x348   : > { %p1864_p11 = pnand %p1863_p9, %p1857_p6 }
 0x34a   : > { %1867 = shalt.err (!%p1864_p11)
}
 0x34b   : > { %s1961_s13 = smov 128   ;;  %s1962_s24 = smov 8  }
 0x34c   : > { %s2296_s3 = sld [smem:[#allocation23_spill]] }
 0x352   : > { %1521 = dma.vmem_to_hbm [thread:$0]  (%p1543_p5), %s1229_s16, 256, %s2296_s3, [#allocation5], %s1961_s13, %s1961_s13, %s1962_s24  }
 0x353   : > { %1919 = dma.done.wait (%p1543_p5), [#allocation5], 256  }
 0x354   : > { %1921 = vsyncadd (%p1543_p5), [#allocation5], 4294967040 }
 0x355 PF: > { %s25_s29 = sadd.s32 1, %s1944_s29   ;;  %s2297_s0 = sld [smem:[#allocation17_spill]] }
 0x356   : > { %p22_p8 = scmp.ge.s32.totalorder %s25_s29, 4   ;;  %s2298_s26 = sld [smem:[#allocation19_spill]] }
 0x357   : > { %s2299_s11 = sld [smem:[#allocation18_spill]]  ;;  %s2300_s24 = smov %s1928_s25 }
 0x358   : > { %s2302_s27 = smov %s1940_s28 }
 0x359   :  { %24 = sbr.rel (!%p22_p8) target bundleno = 13 (0xd), region = 115 }
 0x35b   : > { %s2301_s25 = smov %s2297_s0 }
 0x35d   : > { %s2303_s28 = smov %s2299_s11 }
 0x35e   :  { %1244 = vsyncpa [#allocation4], 1 }
 0x35f   :  { %1246 = vsyncpa [#allocation4 + $0x1], 1 }
 0x360   :  { %1247 = vsyncpa [#allocation7], 1 }
 0x361   :  { %1249 = vsyncpa [#allocation7 + $0x1], 1 }
 0x362   :  { %1250 = vsyncpa [#allocation10], 1 }
 0x363   :  { %1251 = vsyncpa [#allocation5], 1 }
 0x364   :  { %1253 = vsyncpa [#allocation5 + $0x1], 1 }

</bundles_post_ra>
